<compile_context>
chip_gen: v7x
topology: tpu7x:2x2x1
jax: 0.10.0
libtpu: 0.0.40
codegen_flags: <defaults>
</compile_context>

<pallas_src>
import functools
import numpy as np
import jax
import jax.numpy as jnp
from jax.experimental import pallas as pl
from jax.experimental.pallas import tpu as pltpu


# ----------------------------------------------------------------------------
# Fused forward kernel: GRU stack + MLP head, everything VMEM-resident.
# ----------------------------------------------------------------------------
def _red_general_kernel(n_gru, n_head, T, B, H, *refs):
    x_ref = refs[0]
    gru_refs = [refs[1 + 4 * l: 1 + 4 * (l + 1)] for l in range(n_gru)]
    hoff = 1 + 4 * n_gru
    head_refs = [refs[hoff + 2 * i: hoff + 2 * (i + 1)] for i in range(n_head)]
    out_ref = refs[hoff + 2 * n_head]

    # Batch-first (B, T, Fin) -> time-major flat (T*B, Fin) via static slices
    # (tiny, stays in vregs; avoids any HBM transpose pass).
    x = x_ref[...].astype(jnp.float32)
    seq = jnp.concatenate([x[:, t, :] for t in range(T)], axis=0)      # (T*B, Fin)

    for (wih_ref, whh_ref, bi_ref, bhn_ref) in gru_refs:
        wih = wih_ref[...]                                             # (F, 3H)
        whh = whh_ref[...]                                             # (H, 3H)
        bi = bi_ref[...]                                               # (1, 3H)  (r/z biases pre-folded)
        bhn = bhn_ref[...]                                             # (1, H)   (bhh_n only)

        # Input-side gate projections for the WHOLE sequence in one MXU op
        # (hoisted out of the serial recurrence).
        gi = jnp.dot(seq, wih, preferred_element_type=jnp.float32) + bi  # (T*B, 3H)

        h = jnp.zeros((B, H), jnp.float32)
        outs = []
        for t in range(T):                       # T is small & static: fully unrolled
            gi_t = gi[t * B:(t + 1) * B, :]                            # (B, 3H)
            gh = jnp.dot(h, whh, preferred_element_type=jnp.float32)   # (B, 3H)
            r = jax.nn.sigmoid(gi_t[:, :H] + gh[:, :H])
            z = jax.nn.sigmoid(gi_t[:, H:2 * H] + gh[:, H:2 * H])
            n = jnp.tanh(gi_t[:, 2 * H:] + r * (gh[:, 2 * H:] + bhn))
            h = (1.0 - z) * n + z * h
            outs.append(h)
        seq = jnp.concatenate(outs, axis=0)                            # (T*B, H) time-major

    # MLP head on the full (T*B, H) slab (pointwise per row, so row order is free).
    y = seq
    for i, (w_ref, b_ref) in enumerate(head_refs):
        y = jnp.dot(y, w_ref[...], preferred_element_type=jnp.float32) + b_ref[...]
        if i < n_head - 1:                       # ReLU on all but the final Linear
            y = jnp.maximum(y, 0.0)

    Fout = y.shape[-1]
    y3 = y.reshape(T, B, Fout)
    # Scatter back to batch-first output with per-batch stores (B small & static).
    for b in range(B):
        out_ref[b] = y3[:, b, :].astype(out_ref.dtype)


def red_general_forward(input_seq, gru_params, head_params):
    """input_seq: (B, T, Fin) batch-first, like torch.nn.GRU(batch_first=True).

    gru_params: list of (wih (F,3H), whh (H,3H), bi (1,3H), bhn (1,H)) packed layers.
    head_params: list of (w (Din,Dout), b (1,Dout)).
    """
    B, T, Fin = input_seq.shape
    H = gru_params[0][1].shape[0]
    Fout = head_params[-1][0].shape[-1]

    flat_inputs = [input_seq.astype(jnp.float32)]
    for (wih, whh, bi, bhn) in gru_params:
        flat_inputs += [wih, whh, bi, bhn]
    for (w, b) in head_params:
        flat_inputs += [w, b]

    kernel = functools.partial(
        _red_general_kernel, len(gru_params), len(head_params), T, B, H)
    return pl.pallas_call(
        kernel,
        out_shape=jax.ShapeDtypeStruct((B, T, Fout), jnp.float32),
    )(*flat_inputs)


# ----------------------------------------------------------------------------
# Packing: per-gate torch-style params -> fused (F,3H)/(H,3H) layout.
# ----------------------------------------------------------------------------
def pack_gru_params(gru_raw):
    packed = []
    for (wih3, whh3, bih3, bhh3) in gru_raw:
        wih = jnp.concatenate([wih3[0], wih3[1], wih3[2]], axis=1)     # (F, 3H)
        whh = jnp.concatenate([whh3[0], whh3[1], whh3[2]], axis=1)     # (H, 3H)
        # Fold bih+bhh for the r and z gates; keep bhh_n separate (used inside r*(.)).
        bi = jnp.concatenate([bih3[0] + bhh3[0],
                              bih3[1] + bhh3[1],
                              bih3[2]], axis=1)                        # (1, 3H)
        bhn = bhh3[2]                                                  # (1, H)
        packed.append((wih, whh, bi, bhn))
    return packed


# ----------------------------------------------------------------------------
# Pure-JAX reference (per-gate params, matches torch.nn.GRU semantics).
# ----------------------------------------------------------------------------
def _gru_layer_ref(x_tbf, wih, whh, bih, bhh):
    H = whh.shape[-1]
    B = x_tbf.shape[1]

    def step(h, xt):
        gi_r = xt @ wih[0] + bih[0]
        gi_z = xt @ wih[1] + bih[1]
        gi_n = xt @ wih[2] + bih[2]
        gh_r = h @ whh[0] + bhh[0]
        gh_z = h @ whh[1] + bhh[1]
        gh_n = h @ whh[2] + bhh[2]
        r = jax.nn.sigmoid(gi_r + gh_r)
        z = jax.nn.sigmoid(gi_z + gh_z)
        n = jnp.tanh(gi_n + r * gh_n)
        hn = (1.0 - z) * n + z * h
        return hn, hn

    h0 = jnp.zeros((B, H), jnp.float32)
    _, ys = jax.lax.scan(step, h0, x_tbf)
    return ys


def red_general_ref(input_seq, gru_raw, head_params):
    x = jnp.transpose(input_seq, (1, 0, 2)).astype(jnp.float32)
    for (wih, whh, bih, bhh) in gru_raw:
        x = _gru_layer_ref(x, wih, whh, bih, bhh)
    y = jnp.transpose(x, (1, 0, 2))
    n_linear = len(head_params)
    for i, (w, b) in enumerate(head_params):
        y = y @ w + b
        if i < n_linear - 1:
            y = jnp.maximum(y, 0.0)
    return y


# ----------------------------------------------------------------------------
# Deterministic parameter construction (mirrors torch.nn.GRU / nn.Linear shapes).
# ----------------------------------------------------------------------------
def make_params(key, Fin, Fout, n_layers, hidden_size, gru_num_layers,
                head_hidden_sizes):
    gru_raw = []
    k = 1.0 / np.sqrt(hidden_size)
    in_f = Fin
    for _ in range(gru_num_layers):
        key, k1, k2, k3, k4 = jax.random.split(key, 5)
        wih = jax.random.uniform(k1, (3, in_f, hidden_size), jnp.float32, -k, k)
        whh = jax.random.uniform(k2, (3, hidden_size, hidden_size), jnp.float32, -k, k)
        bih = jax.random.uniform(k3, (3, 1, hidden_size), jnp.float32, -k, k)
        bhh = jax.random.uniform(k4, (3, 1, hidden_size), jnp.float32, -k, k)
        gru_raw.append((wih, whh, bih, bhh))
        in_f = hidden_size

    head_params = []
    in_features = hidden_size
    # TODO(synk): trial.suggest_int(...) hyperparameter search has no Pallas
    # equivalent; head widths are fixed deterministically here.
    dims = list(head_hidden_sizes[:n_layers]) + [Fout]
    for d in dims:
        key, k1, k2 = jax.random.split(key, 3)
        kk = 1.0 / np.sqrt(in_features)
        w = jax.random.uniform(k1, (in_features, d), jnp.float32, -kk, kk)
        b = jax.random.uniform(k2, (1, d), jnp.float32, -kk, kk)
        head_params.append((w, b))
        in_features = d
    return gru_raw, head_params


if __name__ == "__main__":
    # Small config consistent with the module's forward.
    B, T = 2, 8
    Fin, Fout = 6, 3
    hidden_size = 32
    gru_num_layers = 2
    n_layers = 2
    head_hidden_sizes = (120, 80)

    key = jax.random.PRNGKey(0)
    key, kx = jax.random.split(key)
    x = jax.random.normal(kx, (B, T, Fin), jnp.float32)

    gru_raw, head_params = make_params(
        key, Fin, Fout, n_layers, hidden_size, gru_num_layers, head_hidden_sizes)
    gru_packed = pack_gru_params(gru_raw)

    out = red_general_forward(x, gru_packed, head_params)
    out = jax.block_until_ready(out)

    ref = jax.block_until_ready(red_general_ref(x, gru_raw, head_params))
    assert out.shape == (B, T, Fout), out.shape
    np.testing.assert_allclose(np.asarray(out), np.asarray(ref), rtol=1e-4, atol=1e-4)

    print("KERNEL_OK")
</pallas_src>

<mosaic_0001>
module attributes {stable_mosaic.version = 11 : i64} {
  func.func @_red_general_kernel(%arg0: memref<2x8x6xf32, #tpu.memory_space<vmem>>, %arg1: memref<6x96xf32, #tpu.memory_space<vmem>>, %arg2: memref<32x96xf32, #tpu.memory_space<vmem>>, %arg3: memref<1x96xf32, #tpu.memory_space<vmem>>, %arg4: memref<1x32xf32, #tpu.memory_space<vmem>>, %arg5: memref<32x96xf32, #tpu.memory_space<vmem>>, %arg6: memref<32x96xf32, #tpu.memory_space<vmem>>, %arg7: memref<1x96xf32, #tpu.memory_space<vmem>>, %arg8: memref<1x32xf32, #tpu.memory_space<vmem>>, %arg9: memref<32x120xf32, #tpu.memory_space<vmem>>, %arg10: memref<1x120xf32, #tpu.memory_space<vmem>>, %arg11: memref<120x80xf32, #tpu.memory_space<vmem>>, %arg12: memref<1x80xf32, #tpu.memory_space<vmem>>, %arg13: memref<80x3xf32, #tpu.memory_space<vmem>>, %arg14: memref<1x3xf32, #tpu.memory_space<vmem>>, %arg15: memref<2x8x3xf32, #tpu.memory_space<vmem>>) attributes {dimension_semantics = [], scalar_prefetch = 0 : i64, scratch_operands = 0 : i64, tpu.core_type = #tpu.core_type<tc>} {
    %c0 = arith.constant 0 : index
    %c0_0 = arith.constant 0 : index
    %c0_1 = arith.constant 0 : index
    %0 = vector.load %arg0[%c0, %c0_0, %c0_1] : memref<2x8x6xf32, #tpu.memory_space<vmem>>, vector<2x8x6xf32>
    %1 = vector.extract_strided_slice %0 {offsets = [0, 0, 0], sizes = [2, 1, 6], strides = [1, 1, 1]} : vector<2x8x6xf32> to vector<2x1x6xf32>
    %2 = vector.shape_cast %1 : vector<2x1x6xf32> to vector<2x6xf32>
    %3 = vector.extract_strided_slice %0 {offsets = [0, 1, 0], sizes = [2, 1, 6], strides = [1, 1, 1]} : vector<2x8x6xf32> to vector<2x1x6xf32>
    %4 = vector.shape_cast %3 : vector<2x1x6xf32> to vector<2x6xf32>
    %5 = vector.extract_strided_slice %0 {offsets = [0, 2, 0], sizes = [2, 1, 6], strides = [1, 1, 1]} : vector<2x8x6xf32> to vector<2x1x6xf32>
    %6 = vector.shape_cast %5 : vector<2x1x6xf32> to vector<2x6xf32>
    %7 = vector.extract_strided_slice %0 {offsets = [0, 3, 0], sizes = [2, 1, 6], strides = [1, 1, 1]} : vector<2x8x6xf32> to vector<2x1x6xf32>
    %8 = vector.shape_cast %7 : vector<2x1x6xf32> to vector<2x6xf32>
    %9 = vector.extract_strided_slice %0 {offsets = [0, 4, 0], sizes = [2, 1, 6], strides = [1, 1, 1]} : vector<2x8x6xf32> to vector<2x1x6xf32>
    %10 = vector.shape_cast %9 : vector<2x1x6xf32> to vector<2x6xf32>
    %11 = vector.extract_strided_slice %0 {offsets = [0, 5, 0], sizes = [2, 1, 6], strides = [1, 1, 1]} : vector<2x8x6xf32> to vector<2x1x6xf32>
    %12 = vector.shape_cast %11 : vector<2x1x6xf32> to vector<2x6xf32>
    %13 = vector.extract_strided_slice %0 {offsets = [0, 6, 0], sizes = [2, 1, 6], strides = [1, 1, 1]} : vector<2x8x6xf32> to vector<2x1x6xf32>
    %14 = vector.shape_cast %13 : vector<2x1x6xf32> to vector<2x6xf32>
    %15 = vector.extract_strided_slice %0 {offsets = [0, 7, 0], sizes = [2, 1, 6], strides = [1, 1, 1]} : vector<2x8x6xf32> to vector<2x1x6xf32>
    %16 = vector.shape_cast %15 : vector<2x1x6xf32> to vector<2x6xf32>
    %17 = tpu.concatenate %2, %4, %6, %8, %10, %12, %14, %16 in 0 : vector<2x6xf32>, vector<2x6xf32>, vector<2x6xf32>, vector<2x6xf32>, vector<2x6xf32>, vector<2x6xf32>, vector<2x6xf32>, vector<2x6xf32> -> vector<16x6xf32>
    %c0_2 = arith.constant 0 : index
    %c0_3 = arith.constant 0 : index
    %18 = vector.load %arg1[%c0_2, %c0_3] : memref<6x96xf32, #tpu.memory_space<vmem>>, vector<6x96xf32>
    %c0_4 = arith.constant 0 : index
    %c0_5 = arith.constant 0 : index
    %19 = vector.load %arg2[%c0_4, %c0_5] : memref<32x96xf32, #tpu.memory_space<vmem>>, vector<32x96xf32>
    %c0_6 = arith.constant 0 : index
    %c0_7 = arith.constant 0 : index
    %20 = vector.load %arg3[%c0_6, %c0_7] : memref<1x96xf32, #tpu.memory_space<vmem>>, vector<1x96xf32>
    %c0_8 = arith.constant 0 : index
    %c0_9 = arith.constant 0 : index
    %21 = vector.load %arg4[%c0_8, %c0_9] : memref<1x32xf32, #tpu.memory_space<vmem>>, vector<1x32xf32>
    %cst = arith.constant dense<0.000000e+00> : vector<16x96xf32>
    %22 = tpu.matmul %17, %18, %cst {dimension_numbers = #tpu.dot_dimension_numbers<[1], [0], [0], [1], [0, 0, 1, 1], [], []>} : vector<16x6xf32>, vector<6x96xf32>, vector<16x96xf32> -> vector<16x96xf32>
    %23 = vector.broadcast %20 : vector<1x96xf32> to vector<16x96xf32>
    %24 = arith.addf %22, %23 : vector<16x96xf32>
    %cst_10 = arith.constant 0.000000e+00 : f32
    %25 = vector.broadcast %cst_10 : f32 to vector<2x32xf32>
    %26 = vector.extract_strided_slice %24 {offsets = [0, 0], sizes = [2, 96], strides = [1, 1]} : vector<16x96xf32> to vector<2x96xf32>
    %cst_11 = arith.constant dense<0.000000e+00> : vector<2x96xf32>
    %27 = tpu.matmul %25, %19, %cst_11 {dimension_numbers = #tpu.dot_dimension_numbers<[1], [0], [0], [1], [0, 0, 1, 1], [], []>} : vector<2x32xf32>, vector<32x96xf32>, vector<2x96xf32> -> vector<2x96xf32>
    %28 = vector.extract_strided_slice %26 {offsets = [0, 0], sizes = [2, 32], strides = [1, 1]} : vector<2x96xf32> to vector<2x32xf32>
    %29 = vector.extract_strided_slice %27 {offsets = [0, 0], sizes = [2, 32], strides = [1, 1]} : vector<2x96xf32> to vector<2x32xf32>
    %30 = arith.addf %28, %29 : vector<2x32xf32>
    %31 = arith.negf %30 : vector<2x32xf32>
    %32 = math.exp %31 : vector<2x32xf32>
    %cst_12 = arith.constant 1.000000e+00 : f32
    %33 = vector.broadcast %cst_12 : f32 to vector<2x32xf32>
    %34 = arith.addf %33, %32 : vector<2x32xf32>
    %35 = arith.divf %33, %34 : vector<2x32xf32>
    %36 = vector.extract_strided_slice %26 {offsets = [0, 32], sizes = [2, 32], strides = [1, 1]} : vector<2x96xf32> to vector<2x32xf32>
    %37 = vector.extract_strided_slice %27 {offsets = [0, 32], sizes = [2, 32], strides = [1, 1]} : vector<2x96xf32> to vector<2x32xf32>
    %38 = arith.addf %36, %37 : vector<2x32xf32>
    %39 = arith.negf %38 : vector<2x32xf32>
    %40 = math.exp %39 : vector<2x32xf32>
    %cst_13 = arith.constant 1.000000e+00 : f32
    %41 = vector.broadcast %cst_13 : f32 to vector<2x32xf32>
    %42 = arith.addf %41, %40 : vector<2x32xf32>
    %43 = arith.divf %41, %42 : vector<2x32xf32>
    %44 = vector.extract_strided_slice %26 {offsets = [0, 64], sizes = [2, 32], strides = [1, 1]} : vector<2x96xf32> to vector<2x32xf32>
    %45 = vector.extract_strided_slice %27 {offsets = [0, 64], sizes = [2, 32], strides = [1, 1]} : vector<2x96xf32> to vector<2x32xf32>
    %46 = vector.broadcast %21 : vector<1x32xf32> to vector<2x32xf32>
    %47 = arith.addf %45, %46 : vector<2x32xf32>
    %48 = arith.mulf %35, %47 : vector<2x32xf32>
    %49 = arith.addf %44, %48 : vector<2x32xf32>
    %50 = math.tanh %49 : vector<2x32xf32>
    %cst_14 = arith.constant 1.000000e+00 : f32
    %51 = vector.broadcast %cst_14 : f32 to vector<2x32xf32>
    %52 = arith.subf %51, %43 : vector<2x32xf32>
    %53 = arith.mulf %52, %50 : vector<2x32xf32>
    %54 = arith.mulf %43, %25 : vector<2x32xf32>
    %55 = arith.addf %53, %54 : vector<2x32xf32>
    %56 = vector.extract_strided_slice %24 {offsets = [2, 0], sizes = [2, 96], strides = [1, 1]} : vector<16x96xf32> to vector<2x96xf32>
    %cst_15 = arith.constant dense<0.000000e+00> : vector<2x96xf32>
    %57 = tpu.matmul %55, %19, %cst_15 {dimension_numbers = #tpu.dot_dimension_numbers<[1], [0], [0], [1], [0, 0, 1, 1], [], []>} : vector<2x32xf32>, vector<32x96xf32>, vector<2x96xf32> -> vector<2x96xf32>
    %58 = vector.extract_strided_slice %56 {offsets = [0, 0], sizes = [2, 32], strides = [1, 1]} : vector<2x96xf32> to vector<2x32xf32>
    %59 = vector.extract_strided_slice %57 {offsets = [0, 0], sizes = [2, 32], strides = [1, 1]} : vector<2x96xf32> to vector<2x32xf32>
    %60 = arith.addf %58, %59 : vector<2x32xf32>
    %61 = arith.negf %60 : vector<2x32xf32>
    %62 = math.exp %61 : vector<2x32xf32>
    %cst_16 = arith.constant 1.000000e+00 : f32
    %63 = vector.broadcast %cst_16 : f32 to vector<2x32xf32>
    %64 = arith.addf %63, %62 : vector<2x32xf32>
    %65 = arith.divf %63, %64 : vector<2x32xf32>
    %66 = vector.extract_strided_slice %56 {offsets = [0, 32], sizes = [2, 32], strides = [1, 1]} : vector<2x96xf32> to vector<2x32xf32>
    %67 = vector.extract_strided_slice %57 {offsets = [0, 32], sizes = [2, 32], strides = [1, 1]} : vector<2x96xf32> to vector<2x32xf32>
    %68 = arith.addf %66, %67 : vector<2x32xf32>
    %69 = arith.negf %68 : vector<2x32xf32>
    %70 = math.exp %69 : vector<2x32xf32>
    %cst_17 = arith.constant 1.000000e+00 : f32
    %71 = vector.broadcast %cst_17 : f32 to vector<2x32xf32>
    %72 = arith.addf %71, %70 : vector<2x32xf32>
    %73 = arith.divf %71, %72 : vector<2x32xf32>
    %74 = vector.extract_strided_slice %56 {offsets = [0, 64], sizes = [2, 32], strides = [1, 1]} : vector<2x96xf32> to vector<2x32xf32>
    %75 = vector.extract_strided_slice %57 {offsets = [0, 64], sizes = [2, 32], strides = [1, 1]} : vector<2x96xf32> to vector<2x32xf32>
    %76 = vector.broadcast %21 : vector<1x32xf32> to vector<2x32xf32>
    %77 = arith.addf %75, %76 : vector<2x32xf32>
    %78 = arith.mulf %65, %77 : vector<2x32xf32>
    %79 = arith.addf %74, %78 : vector<2x32xf32>
    %80 = math.tanh %79 : vector<2x32xf32>
    %cst_18 = arith.constant 1.000000e+00 : f32
    %81 = vector.broadcast %cst_18 : f32 to vector<2x32xf32>
    %82 = arith.subf %81, %73 : vector<2x32xf32>
    %83 = arith.mulf %82, %80 : vector<2x32xf32>
    %84 = arith.mulf %73, %55 : vector<2x32xf32>
    %85 = arith.addf %83, %84 : vector<2x32xf32>
    %86 = vector.extract_strided_slice %24 {offsets = [4, 0], sizes = [2, 96], strides = [1, 1]} : vector<16x96xf32> to vector<2x96xf32>
    %cst_19 = arith.constant dense<0.000000e+00> : vector<2x96xf32>
    %87 = tpu.matmul %85, %19, %cst_19 {dimension_numbers = #tpu.dot_dimension_numbers<[1], [0], [0], [1], [0, 0, 1, 1], [], []>} : vector<2x32xf32>, vector<32x96xf32>, vector<2x96xf32> -> vector<2x96xf32>
    %88 = vector.extract_strided_slice %86 {offsets = [0, 0], sizes = [2, 32], strides = [1, 1]} : vector<2x96xf32> to vector<2x32xf32>
    %89 = vector.extract_strided_slice %87 {offsets = [0, 0], sizes = [2, 32], strides = [1, 1]} : vector<2x96xf32> to vector<2x32xf32>
    %90 = arith.addf %88, %89 : vector<2x32xf32>
    %91 = arith.negf %90 : vector<2x32xf32>
    %92 = math.exp %91 : vector<2x32xf32>
    %cst_20 = arith.constant 1.000000e+00 : f32
    %93 = vector.broadcast %cst_20 : f32 to vector<2x32xf32>
    %94 = arith.addf %93, %92 : vector<2x32xf32>
    %95 = arith.divf %93, %94 : vector<2x32xf32>
    %96 = vector.extract_strided_slice %86 {offsets = [0, 32], sizes = [2, 32], strides = [1, 1]} : vector<2x96xf32> to vector<2x32xf32>
    %97 = vector.extract_strided_slice %87 {offsets = [0, 32], sizes = [2, 32], strides = [1, 1]} : vector<2x96xf32> to vector<2x32xf32>
    %98 = arith.addf %96, %97 : vector<2x32xf32>
    %99 = arith.negf %98 : vector<2x32xf32>
    %100 = math.exp %99 : vector<2x32xf32>
    %cst_21 = arith.constant 1.000000e+00 : f32
    %101 = vector.broadcast %cst_21 : f32 to vector<2x32xf32>
    %102 = arith.addf %101, %100 : vector<2x32xf32>
    %103 = arith.divf %101, %102 : vector<2x32xf32>
    %104 = vector.extract_strided_slice %86 {offsets = [0, 64], sizes = [2, 32], strides = [1, 1]} : vector<2x96xf32> to vector<2x32xf32>
    %105 = vector.extract_strided_slice %87 {offsets = [0, 64], sizes = [2, 32], strides = [1, 1]} : vector<2x96xf32> to vector<2x32xf32>
    %106 = vector.broadcast %21 : vector<1x32xf32> to vector<2x32xf32>
    %107 = arith.addf %105, %106 : vector<2x32xf32>
    %108 = arith.mulf %95, %107 : vector<2x32xf32>
    %109 = arith.addf %104, %108 : vector<2x32xf32>
    %110 = math.tanh %109 : vector<2x32xf32>
    %cst_22 = arith.constant 1.000000e+00 : f32
    %111 = vector.broadcast %cst_22 : f32 to vector<2x32xf32>
    %112 = arith.subf %111, %103 : vector<2x32xf32>
    %113 = arith.mulf %112, %110 : vector<2x32xf32>
    %114 = arith.mulf %103, %85 : vector<2x32xf32>
    %115 = arith.addf %113, %114 : vector<2x32xf32>
    %116 = vector.extract_strided_slice %24 {offsets = [6, 0], sizes = [2, 96], strides = [1, 1]} : vector<16x96xf32> to vector<2x96xf32>
    %cst_23 = arith.constant dense<0.000000e+00> : vector<2x96xf32>
    %117 = tpu.matmul %115, %19, %cst_23 {dimension_numbers = #tpu.dot_dimension_numbers<[1], [0], [0], [1], [0, 0, 1, 1], [], []>} : vector<2x32xf32>, vector<32x96xf32>, vector<2x96xf32> -> vector<2x96xf32>
    %118 = vector.extract_strided_slice %116 {offsets = [0, 0], sizes = [2, 32], strides = [1, 1]} : vector<2x96xf32> to vector<2x32xf32>
    %119 = vector.extract_strided_slice %117 {offsets = [0, 0], sizes = [2, 32], strides = [1, 1]} : vector<2x96xf32> to vector<2x32xf32>
    %120 = arith.addf %118, %119 : vector<2x32xf32>
    %121 = arith.negf %120 : vector<2x32xf32>
    %122 = math.exp %121 : vector<2x32xf32>
    %cst_24 = arith.constant 1.000000e+00 : f32
    %123 = vector.broadcast %cst_24 : f32 to vector<2x32xf32>
    %124 = arith.addf %123, %122 : vector<2x32xf32>
    %125 = arith.divf %123, %124 : vector<2x32xf32>
    %126 = vector.extract_strided_slice %116 {offsets = [0, 32], sizes = [2, 32], strides = [1, 1]} : vector<2x96xf32> to vector<2x32xf32>
    %127 = vector.extract_strided_slice %117 {offsets = [0, 32], sizes = [2, 32], strides = [1, 1]} : vector<2x96xf32> to vector<2x32xf32>
    %128 = arith.addf %126, %127 : vector<2x32xf32>
    %129 = arith.negf %128 : vector<2x32xf32>
    %130 = math.exp %129 : vector<2x32xf32>
    %cst_25 = arith.constant 1.000000e+00 : f32
    %131 = vector.broadcast %cst_25 : f32 to vector<2x32xf32>
    %132 = arith.addf %131, %130 : vector<2x32xf32>
    %133 = arith.divf %131, %132 : vector<2x32xf32>
    %134 = vector.extract_strided_slice %116 {offsets = [0, 64], sizes = [2, 32], strides = [1, 1]} : vector<2x96xf32> to vector<2x32xf32>
    %135 = vector.extract_strided_slice %117 {offsets = [0, 64], sizes = [2, 32], strides = [1, 1]} : vector<2x96xf32> to vector<2x32xf32>
    %136 = vector.broadcast %21 : vector<1x32xf32> to vector<2x32xf32>
    %137 = arith.addf %135, %136 : vector<2x32xf32>
    %138 = arith.mulf %125, %137 : vector<2x32xf32>
    %139 = arith.addf %134, %138 : vector<2x32xf32>
    %140 = math.tanh %139 : vector<2x32xf32>
    %cst_26 = arith.constant 1.000000e+00 : f32
    %141 = vector.broadcast %cst_26 : f32 to vector<2x32xf32>
    %142 = arith.subf %141, %133 : vector<2x32xf32>
    %143 = arith.mulf %142, %140 : vector<2x32xf32>
    %144 = arith.mulf %133, %115 : vector<2x32xf32>
    %145 = arith.addf %143, %144 : vector<2x32xf32>
    %146 = vector.extract_strided_slice %24 {offsets = [8, 0], sizes = [2, 96], strides = [1, 1]} : vector<16x96xf32> to vector<2x96xf32>
    %cst_27 = arith.constant dense<0.000000e+00> : vector<2x96xf32>
    %147 = tpu.matmul %145, %19, %cst_27 {dimension_numbers = #tpu.dot_dimension_numbers<[1], [0], [0], [1], [0, 0, 1, 1], [], []>} : vector<2x32xf32>, vector<32x96xf32>, vector<2x96xf32> -> vector<2x96xf32>
    %148 = vector.extract_strided_slice %146 {offsets = [0, 0], sizes = [2, 32], strides = [1, 1]} : vector<2x96xf32> to vector<2x32xf32>
    %149 = vector.extract_strided_slice %147 {offsets = [0, 0], sizes = [2, 32], strides = [1, 1]} : vector<2x96xf32> to vector<2x32xf32>
    %150 = arith.addf %148, %149 : vector<2x32xf32>
    %151 = arith.negf %150 : vector<2x32xf32>
    %152 = math.exp %151 : vector<2x32xf32>
    %cst_28 = arith.constant 1.000000e+00 : f32
    %153 = vector.broadcast %cst_28 : f32 to vector<2x32xf32>
    %154 = arith.addf %153, %152 : vector<2x32xf32>
    %155 = arith.divf %153, %154 : vector<2x32xf32>
    %156 = vector.extract_strided_slice %146 {offsets = [0, 32], sizes = [2, 32], strides = [1, 1]} : vector<2x96xf32> to vector<2x32xf32>
    %157 = vector.extract_strided_slice %147 {offsets = [0, 32], sizes = [2, 32], strides = [1, 1]} : vector<2x96xf32> to vector<2x32xf32>
    %158 = arith.addf %156, %157 : vector<2x32xf32>
    %159 = arith.negf %158 : vector<2x32xf32>
    %160 = math.exp %159 : vector<2x32xf32>
    %cst_29 = arith.constant 1.000000e+00 : f32
    %161 = vector.broadcast %cst_29 : f32 to vector<2x32xf32>
    %162 = arith.addf %161, %160 : vector<2x32xf32>
    %163 = arith.divf %161, %162 : vector<2x32xf32>
    %164 = vector.extract_strided_slice %146 {offsets = [0, 64], sizes = [2, 32], strides = [1, 1]} : vector<2x96xf32> to vector<2x32xf32>
    %165 = vector.extract_strided_slice %147 {offsets = [0, 64], sizes = [2, 32], strides = [1, 1]} : vector<2x96xf32> to vector<2x32xf32>
    %166 = vector.broadcast %21 : vector<1x32xf32> to vector<2x32xf32>
    %167 = arith.addf %165, %166 : vector<2x32xf32>
    %168 = arith.mulf %155, %167 : vector<2x32xf32>
    %169 = arith.addf %164, %168 : vector<2x32xf32>
    %170 = math.tanh %169 : vector<2x32xf32>
    %cst_30 = arith.constant 1.000000e+00 : f32
    %171 = vector.broadcast %cst_30 : f32 to vector<2x32xf32>
    %172 = arith.subf %171, %163 : vector<2x32xf32>
    %173 = arith.mulf %172, %170 : vector<2x32xf32>
    %174 = arith.mulf %163, %145 : vector<2x32xf32>
    %175 = arith.addf %173, %174 : vector<2x32xf32>
    %176 = vector.extract_strided_slice %24 {offsets = [10, 0], sizes = [2, 96], strides = [1, 1]} : vector<16x96xf32> to vector<2x96xf32>
    %cst_31 = arith.constant dense<0.000000e+00> : vector<2x96xf32>
    %177 = tpu.matmul %175, %19, %cst_31 {dimension_numbers = #tpu.dot_dimension_numbers<[1], [0], [0], [1], [0, 0, 1, 1], [], []>} : vector<2x32xf32>, vector<32x96xf32>, vector<2x96xf32> -> vector<2x96xf32>
    %178 = vector.extract_strided_slice %176 {offsets = [0, 0], sizes = [2, 32], strides = [1, 1]} : vector<2x96xf32> to vector<2x32xf32>
    %179 = vector.extract_strided_slice %177 {offsets = [0, 0], sizes = [2, 32], strides = [1, 1]} : vector<2x96xf32> to vector<2x32xf32>
    %180 = arith.addf %178, %179 : vector<2x32xf32>
    %181 = arith.negf %180 : vector<2x32xf32>
    %182 = math.exp %181 : vector<2x32xf32>
    %cst_32 = arith.constant 1.000000e+00 : f32
    %183 = vector.broadcast %cst_32 : f32 to vector<2x32xf32>
    %184 = arith.addf %183, %182 : vector<2x32xf32>
    %185 = arith.divf %183, %184 : vector<2x32xf32>
    %186 = vector.extract_strided_slice %176 {offsets = [0, 32], sizes = [2, 32], strides = [1, 1]} : vector<2x96xf32> to vector<2x32xf32>
    %187 = vector.extract_strided_slice %177 {offsets = [0, 32], sizes = [2, 32], strides = [1, 1]} : vector<2x96xf32> to vector<2x32xf32>
    %188 = arith.addf %186, %187 : vector<2x32xf32>
    %189 = arith.negf %188 : vector<2x32xf32>
    %190 = math.exp %189 : vector<2x32xf32>
    %cst_33 = arith.constant 1.000000e+00 : f32
    %191 = vector.broadcast %cst_33 : f32 to vector<2x32xf32>
    %192 = arith.addf %191, %190 : vector<2x32xf32>
    %193 = arith.divf %191, %192 : vector<2x32xf32>
    %194 = vector.extract_strided_slice %176 {offsets = [0, 64], sizes = [2, 32], strides = [1, 1]} : vector<2x96xf32> to vector<2x32xf32>
    %195 = vector.extract_strided_slice %177 {offsets = [0, 64], sizes = [2, 32], strides = [1, 1]} : vector<2x96xf32> to vector<2x32xf32>
    %196 = vector.broadcast %21 : vector<1x32xf32> to vector<2x32xf32>
    %197 = arith.addf %195, %196 : vector<2x32xf32>
    %198 = arith.mulf %185, %197 : vector<2x32xf32>
    %199 = arith.addf %194, %198 : vector<2x32xf32>
    %200 = math.tanh %199 : vector<2x32xf32>
    %cst_34 = arith.constant 1.000000e+00 : f32
    %201 = vector.broadcast %cst_34 : f32 to vector<2x32xf32>
    %202 = arith.subf %201, %193 : vector<2x32xf32>
    %203 = arith.mulf %202, %200 : vector<2x32xf32>
    %204 = arith.mulf %193, %175 : vector<2x32xf32>
    %205 = arith.addf %203, %204 : vector<2x32xf32>
    %206 = vector.extract_strided_slice %24 {offsets = [12, 0], sizes = [2, 96], strides = [1, 1]} : vector<16x96xf32> to vector<2x96xf32>
    %cst_35 = arith.constant dense<0.000000e+00> : vector<2x96xf32>
    %207 = tpu.matmul %205, %19, %cst_35 {dimension_numbers = #tpu.dot_dimension_numbers<[1], [0], [0], [1], [0, 0, 1, 1], [], []>} : vector<2x32xf32>, vector<32x96xf32>, vector<2x96xf32> -> vector<2x96xf32>
    %208 = vector.extract_strided_slice %206 {offsets = [0, 0], sizes = [2, 32], strides = [1, 1]} : vector<2x96xf32> to vector<2x32xf32>
    %209 = vector.extract_strided_slice %207 {offsets = [0, 0], sizes = [2, 32], strides = [1, 1]} : vector<2x96xf32> to vector<2x32xf32>
    %210 = arith.addf %208, %209 : vector<2x32xf32>
    %211 = arith.negf %210 : vector<2x32xf32>
    %212 = math.exp %211 : vector<2x32xf32>
    %cst_36 = arith.constant 1.000000e+00 : f32
    %213 = vector.broadcast %cst_36 : f32 to vector<2x32xf32>
    %214 = arith.addf %213, %212 : vector<2x32xf32>
    %215 = arith.divf %213, %214 : vector<2x32xf32>
    %216 = vector.extract_strided_slice %206 {offsets = [0, 32], sizes = [2, 32], strides = [1, 1]} : vector<2x96xf32> to vector<2x32xf32>
    %217 = vector.extract_strided_slice %207 {offsets = [0, 32], sizes = [2, 32], strides = [1, 1]} : vector<2x96xf32> to vector<2x32xf32>
    %218 = arith.addf %216, %217 : vector<2x32xf32>
    %219 = arith.negf %218 : vector<2x32xf32>
    %220 = math.exp %219 : vector<2x32xf32>
    %cst_37 = arith.constant 1.000000e+00 : f32
    %221 = vector.broadcast %cst_37 : f32 to vector<2x32xf32>
    %222 = arith.addf %221, %220 : vector<2x32xf32>
    %223 = arith.divf %221, %222 : vector<2x32xf32>
    %224 = vector.extract_strided_slice %206 {offsets = [0, 64], sizes = [2, 32], strides = [1, 1]} : vector<2x96xf32> to vector<2x32xf32>
    %225 = vector.extract_strided_slice %207 {offsets = [0, 64], sizes = [2, 32], strides = [1, 1]} : vector<2x96xf32> to vector<2x32xf32>
    %226 = vector.broadcast %21 : vector<1x32xf32> to vector<2x32xf32>
    %227 = arith.addf %225, %226 : vector<2x32xf32>
    %228 = arith.mulf %215, %227 : vector<2x32xf32>
    %229 = arith.addf %224, %228 : vector<2x32xf32>
    %230 = math.tanh %229 : vector<2x32xf32>
    %cst_38 = arith.constant 1.000000e+00 : f32
    %231 = vector.broadcast %cst_38 : f32 to vector<2x32xf32>
    %232 = arith.subf %231, %223 : vector<2x32xf32>
    %233 = arith.mulf %232, %230 : vector<2x32xf32>
    %234 = arith.mulf %223, %205 : vector<2x32xf32>
    %235 = arith.addf %233, %234 : vector<2x32xf32>
    %236 = vector.extract_strided_slice %24 {offsets = [14, 0], sizes = [2, 96], strides = [1, 1]} : vector<16x96xf32> to vector<2x96xf32>
    %cst_39 = arith.constant dense<0.000000e+00> : vector<2x96xf32>
    %237 = tpu.matmul %235, %19, %cst_39 {dimension_numbers = #tpu.dot_dimension_numbers<[1], [0], [0], [1], [0, 0, 1, 1], [], []>} : vector<2x32xf32>, vector<32x96xf32>, vector<2x96xf32> -> vector<2x96xf32>
    %238 = vector.extract_strided_slice %236 {offsets = [0, 0], sizes = [2, 32], strides = [1, 1]} : vector<2x96xf32> to vector<2x32xf32>
    %239 = vector.extract_strided_slice %237 {offsets = [0, 0], sizes = [2, 32], strides = [1, 1]} : vector<2x96xf32> to vector<2x32xf32>
    %240 = arith.addf %238, %239 : vector<2x32xf32>
    %241 = arith.negf %240 : vector<2x32xf32>
    %242 = math.exp %241 : vector<2x32xf32>
    %cst_40 = arith.constant 1.000000e+00 : f32
    %243 = vector.broadcast %cst_40 : f32 to vector<2x32xf32>
    %244 = arith.addf %243, %242 : vector<2x32xf32>
    %245 = arith.divf %243, %244 : vector<2x32xf32>
    %246 = vector.extract_strided_slice %236 {offsets = [0, 32], sizes = [2, 32], strides = [1, 1]} : vector<2x96xf32> to vector<2x32xf32>
    %247 = vector.extract_strided_slice %237 {offsets = [0, 32], sizes = [2, 32], strides = [1, 1]} : vector<2x96xf32> to vector<2x32xf32>
    %248 = arith.addf %246, %247 : vector<2x32xf32>
    %249 = arith.negf %248 : vector<2x32xf32>
    %250 = math.exp %249 : vector<2x32xf32>
    %cst_41 = arith.constant 1.000000e+00 : f32
    %251 = vector.broadcast %cst_41 : f32 to vector<2x32xf32>
    %252 = arith.addf %251, %250 : vector<2x32xf32>
    %253 = arith.divf %251, %252 : vector<2x32xf32>
    %254 = vector.extract_strided_slice %236 {offsets = [0, 64], sizes = [2, 32], strides = [1, 1]} : vector<2x96xf32> to vector<2x32xf32>
    %255 = vector.extract_strided_slice %237 {offsets = [0, 64], sizes = [2, 32], strides = [1, 1]} : vector<2x96xf32> to vector<2x32xf32>
    %256 = vector.broadcast %21 : vector<1x32xf32> to vector<2x32xf32>
    %257 = arith.addf %255, %256 : vector<2x32xf32>
    %258 = arith.mulf %245, %257 : vector<2x32xf32>
    %259 = arith.addf %254, %258 : vector<2x32xf32>
    %260 = math.tanh %259 : vector<2x32xf32>
    %cst_42 = arith.constant 1.000000e+00 : f32
    %261 = vector.broadcast %cst_42 : f32 to vector<2x32xf32>
    %262 = arith.subf %261, %253 : vector<2x32xf32>
    %263 = arith.mulf %262, %260 : vector<2x32xf32>
    %264 = arith.mulf %253, %235 : vector<2x32xf32>
    %265 = arith.addf %263, %264 : vector<2x32xf32>
    %266 = tpu.concatenate %55, %85, %115, %145, %175, %205, %235, %265 in 0 : vector<2x32xf32>, vector<2x32xf32>, vector<2x32xf32>, vector<2x32xf32>, vector<2x32xf32>, vector<2x32xf32>, vector<2x32xf32>, vector<2x32xf32> -> vector<16x32xf32>
    %c0_43 = arith.constant 0 : index
    %c0_44 = arith.constant 0 : index
    %267 = vector.load %arg5[%c0_43, %c0_44] : memref<32x96xf32, #tpu.memory_space<vmem>>, vector<32x96xf32>
    %c0_45 = arith.constant 0 : index
    %c0_46 = arith.constant 0 : index
    %268 = vector.load %arg6[%c0_45, %c0_46] : memref<32x96xf32, #tpu.memory_space<vmem>>, vector<32x96xf32>
    %c0_47 = arith.constant 0 : index
    %c0_48 = arith.constant 0 : index
    %269 = vector.load %arg7[%c0_47, %c0_48] : memref<1x96xf32, #tpu.memory_space<vmem>>, vector<1x96xf32>
    %c0_49 = arith.constant 0 : index
    %c0_50 = arith.constant 0 : index
    %270 = vector.load %arg8[%c0_49, %c0_50] : memref<1x32xf32, #tpu.memory_space<vmem>>, vector<1x32xf32>
    %cst_51 = arith.constant dense<0.000000e+00> : vector<16x96xf32>
    %271 = tpu.matmul %266, %267, %cst_51 {dimension_numbers = #tpu.dot_dimension_numbers<[1], [0], [0], [1], [0, 0, 1, 1], [], []>} : vector<16x32xf32>, vector<32x96xf32>, vector<16x96xf32> -> vector<16x96xf32>
    %272 = vector.broadcast %269 : vector<1x96xf32> to vector<16x96xf32>
    %273 = arith.addf %271, %272 : vector<16x96xf32>
    %cst_52 = arith.constant 0.000000e+00 : f32
    %274 = vector.broadcast %cst_52 : f32 to vector<2x32xf32>
    %275 = vector.extract_strided_slice %273 {offsets = [0, 0], sizes = [2, 96], strides = [1, 1]} : vector<16x96xf32> to vector<2x96xf32>
    %cst_53 = arith.constant dense<0.000000e+00> : vector<2x96xf32>
    %276 = tpu.matmul %274, %268, %cst_53 {dimension_numbers = #tpu.dot_dimension_numbers<[1], [0], [0], [1], [0, 0, 1, 1], [], []>} : vector<2x32xf32>, vector<32x96xf32>, vector<2x96xf32> -> vector<2x96xf32>
    %277 = vector.extract_strided_slice %275 {offsets = [0, 0], sizes = [2, 32], strides = [1, 1]} : vector<2x96xf32> to vector<2x32xf32>
    %278 = vector.extract_strided_slice %276 {offsets = [0, 0], sizes = [2, 32], strides = [1, 1]} : vector<2x96xf32> to vector<2x32xf32>
    %279 = arith.addf %277, %278 : vector<2x32xf32>
    %280 = arith.negf %279 : vector<2x32xf32>
    %281 = math.exp %280 : vector<2x32xf32>
    %cst_54 = arith.constant 1.000000e+00 : f32
    %282 = vector.broadcast %cst_54 : f32 to vector<2x32xf32>
    %283 = arith.addf %282, %281 : vector<2x32xf32>
    %284 = arith.divf %282, %283 : vector<2x32xf32>
    %285 = vector.extract_strided_slice %275 {offsets = [0, 32], sizes = [2, 32], strides = [1, 1]} : vector<2x96xf32> to vector<2x32xf32>
    %286 = vector.extract_strided_slice %276 {offsets = [0, 32], sizes = [2, 32], strides = [1, 1]} : vector<2x96xf32> to vector<2x32xf32>
    %287 = arith.addf %285, %286 : vector<2x32xf32>
    %288 = arith.negf %287 : vector<2x32xf32>
    %289 = math.exp %288 : vector<2x32xf32>
    %cst_55 = arith.constant 1.000000e+00 : f32
    %290 = vector.broadcast %cst_55 : f32 to vector<2x32xf32>
    %291 = arith.addf %290, %289 : vector<2x32xf32>
    %292 = arith.divf %290, %291 : vector<2x32xf32>
    %293 = vector.extract_strided_slice %275 {offsets = [0, 64], sizes = [2, 32], strides = [1, 1]} : vector<2x96xf32> to vector<2x32xf32>
    %294 = vector.extract_strided_slice %276 {offsets = [0, 64], sizes = [2, 32], strides = [1, 1]} : vector<2x96xf32> to vector<2x32xf32>
    %295 = vector.broadcast %270 : vector<1x32xf32> to vector<2x32xf32>
    %296 = arith.addf %294, %295 : vector<2x32xf32>
    %297 = arith.mulf %284, %296 : vector<2x32xf32>
    %298 = arith.addf %293, %297 : vector<2x32xf32>
    %299 = math.tanh %298 : vector<2x32xf32>
    %cst_56 = arith.constant 1.000000e+00 : f32
    %300 = vector.broadcast %cst_56 : f32 to vector<2x32xf32>
    %301 = arith.subf %300, %292 : vector<2x32xf32>
    %302 = arith.mulf %301, %299 : vector<2x32xf32>
    %303 = arith.mulf %292, %274 : vector<2x32xf32>
    %304 = arith.addf %302, %303 : vector<2x32xf32>
    %305 = vector.extract_strided_slice %273 {offsets = [2, 0], sizes = [2, 96], strides = [1, 1]} : vector<16x96xf32> to vector<2x96xf32>
    %cst_57 = arith.constant dense<0.000000e+00> : vector<2x96xf32>
    %306 = tpu.matmul %304, %268, %cst_57 {dimension_numbers = #tpu.dot_dimension_numbers<[1], [0], [0], [1], [0, 0, 1, 1], [], []>} : vector<2x32xf32>, vector<32x96xf32>, vector<2x96xf32> -> vector<2x96xf32>
    %307 = vector.extract_strided_slice %305 {offsets = [0, 0], sizes = [2, 32], strides = [1, 1]} : vector<2x96xf32> to vector<2x32xf32>
    %308 = vector.extract_strided_slice %306 {offsets = [0, 0], sizes = [2, 32], strides = [1, 1]} : vector<2x96xf32> to vector<2x32xf32>
    %309 = arith.addf %307, %308 : vector<2x32xf32>
    %310 = arith.negf %309 : vector<2x32xf32>
    %311 = math.exp %310 : vector<2x32xf32>
    %cst_58 = arith.constant 1.000000e+00 : f32
    %312 = vector.broadcast %cst_58 : f32 to vector<2x32xf32>
    %313 = arith.addf %312, %311 : vector<2x32xf32>
    %314 = arith.divf %312, %313 : vector<2x32xf32>
    %315 = vector.extract_strided_slice %305 {offsets = [0, 32], sizes = [2, 32], strides = [1, 1]} : vector<2x96xf32> to vector<2x32xf32>
    %316 = vector.extract_strided_slice %306 {offsets = [0, 32], sizes = [2, 32], strides = [1, 1]} : vector<2x96xf32> to vector<2x32xf32>
    %317 = arith.addf %315, %316 : vector<2x32xf32>
    %318 = arith.negf %317 : vector<2x32xf32>
    %319 = math.exp %318 : vector<2x32xf32>
    %cst_59 = arith.constant 1.000000e+00 : f32
    %320 = vector.broadcast %cst_59 : f32 to vector<2x32xf32>
    %321 = arith.addf %320, %319 : vector<2x32xf32>
    %322 = arith.divf %320, %321 : vector<2x32xf32>
    %323 = vector.extract_strided_slice %305 {offsets = [0, 64], sizes = [2, 32], strides = [1, 1]} : vector<2x96xf32> to vector<2x32xf32>
    %324 = vector.extract_strided_slice %306 {offsets = [0, 64], sizes = [2, 32], strides = [1, 1]} : vector<2x96xf32> to vector<2x32xf32>
    %325 = vector.broadcast %270 : vector<1x32xf32> to vector<2x32xf32>
    %326 = arith.addf %324, %325 : vector<2x32xf32>
    %327 = arith.mulf %314, %326 : vector<2x32xf32>
    %328 = arith.addf %323, %327 : vector<2x32xf32>
    %329 = math.tanh %328 : vector<2x32xf32>
    %cst_60 = arith.constant 1.000000e+00 : f32
    %330 = vector.broadcast %cst_60 : f32 to vector<2x32xf32>
    %331 = arith.subf %330, %322 : vector<2x32xf32>
    %332 = arith.mulf %331, %329 : vector<2x32xf32>
    %333 = arith.mulf %322, %304 : vector<2x32xf32>
    %334 = arith.addf %332, %333 : vector<2x32xf32>
    %335 = vector.extract_strided_slice %273 {offsets = [4, 0], sizes = [2, 96], strides = [1, 1]} : vector<16x96xf32> to vector<2x96xf32>
    %cst_61 = arith.constant dense<0.000000e+00> : vector<2x96xf32>
    %336 = tpu.matmul %334, %268, %cst_61 {dimension_numbers = #tpu.dot_dimension_numbers<[1], [0], [0], [1], [0, 0, 1, 1], [], []>} : vector<2x32xf32>, vector<32x96xf32>, vector<2x96xf32> -> vector<2x96xf32>
    %337 = vector.extract_strided_slice %335 {offsets = [0, 0], sizes = [2, 32], strides = [1, 1]} : vector<2x96xf32> to vector<2x32xf32>
    %338 = vector.extract_strided_slice %336 {offsets = [0, 0], sizes = [2, 32], strides = [1, 1]} : vector<2x96xf32> to vector<2x32xf32>
    %339 = arith.addf %337, %338 : vector<2x32xf32>
    %340 = arith.negf %339 : vector<2x32xf32>
    %341 = math.exp %340 : vector<2x32xf32>
    %cst_62 = arith.constant 1.000000e+00 : f32
    %342 = vector.broadcast %cst_62 : f32 to vector<2x32xf32>
    %343 = arith.addf %342, %341 : vector<2x32xf32>
    %344 = arith.divf %342, %343 : vector<2x32xf32>
    %345 = vector.extract_strided_slice %335 {offsets = [0, 32], sizes = [2, 32], strides = [1, 1]} : vector<2x96xf32> to vector<2x32xf32>
    %346 = vector.extract_strided_slice %336 {offsets = [0, 32], sizes = [2, 32], strides = [1, 1]} : vector<2x96xf32> to vector<2x32xf32>
    %347 = arith.addf %345, %346 : vector<2x32xf32>
    %348 = arith.negf %347 : vector<2x32xf32>
    %349 = math.exp %348 : vector<2x32xf32>
    %cst_63 = arith.constant 1.000000e+00 : f32
    %350 = vector.broadcast %cst_63 : f32 to vector<2x32xf32>
    %351 = arith.addf %350, %349 : vector<2x32xf32>
    %352 = arith.divf %350, %351 : vector<2x32xf32>
    %353 = vector.extract_strided_slice %335 {offsets = [0, 64], sizes = [2, 32], strides = [1, 1]} : vector<2x96xf32> to vector<2x32xf32>
    %354 = vector.extract_strided_slice %336 {offsets = [0, 64], sizes = [2, 32], strides = [1, 1]} : vector<2x96xf32> to vector<2x32xf32>
    %355 = vector.broadcast %270 : vector<1x32xf32> to vector<2x32xf32>
    %356 = arith.addf %354, %355 : vector<2x32xf32>
    %357 = arith.mulf %344, %356 : vector<2x32xf32>
    %358 = arith.addf %353, %357 : vector<2x32xf32>
    %359 = math.tanh %358 : vector<2x32xf32>
    %cst_64 = arith.constant 1.000000e+00 : f32
    %360 = vector.broadcast %cst_64 : f32 to vector<2x32xf32>
    %361 = arith.subf %360, %352 : vector<2x32xf32>
    %362 = arith.mulf %361, %359 : vector<2x32xf32>
    %363 = arith.mulf %352, %334 : vector<2x32xf32>
    %364 = arith.addf %362, %363 : vector<2x32xf32>
    %365 = vector.extract_strided_slice %273 {offsets = [6, 0], sizes = [2, 96], strides = [1, 1]} : vector<16x96xf32> to vector<2x96xf32>
    %cst_65 = arith.constant dense<0.000000e+00> : vector<2x96xf32>
    %366 = tpu.matmul %364, %268, %cst_65 {dimension_numbers = #tpu.dot_dimension_numbers<[1], [0], [0], [1], [0, 0, 1, 1], [], []>} : vector<2x32xf32>, vector<32x96xf32>, vector<2x96xf32> -> vector<2x96xf32>
    %367 = vector.extract_strided_slice %365 {offsets = [0, 0], sizes = [2, 32], strides = [1, 1]} : vector<2x96xf32> to vector<2x32xf32>
    %368 = vector.extract_strided_slice %366 {offsets = [0, 0], sizes = [2, 32], strides = [1, 1]} : vector<2x96xf32> to vector<2x32xf32>
    %369 = arith.addf %367, %368 : vector<2x32xf32>
    %370 = arith.negf %369 : vector<2x32xf32>
    %371 = math.exp %370 : vector<2x32xf32>
    %cst_66 = arith.constant 1.000000e+00 : f32
    %372 = vector.broadcast %cst_66 : f32 to vector<2x32xf32>
    %373 = arith.addf %372, %371 : vector<2x32xf32>
    %374 = arith.divf %372, %373 : vector<2x32xf32>
    %375 = vector.extract_strided_slice %365 {offsets = [0, 32], sizes = [2, 32], strides = [1, 1]} : vector<2x96xf32> to vector<2x32xf32>
    %376 = vector.extract_strided_slice %366 {offsets = [0, 32], sizes = [2, 32], strides = [1, 1]} : vector<2x96xf32> to vector<2x32xf32>
    %377 = arith.addf %375, %376 : vector<2x32xf32>
    %378 = arith.negf %377 : vector<2x32xf32>
    %379 = math.exp %378 : vector<2x32xf32>
    %cst_67 = arith.constant 1.000000e+00 : f32
    %380 = vector.broadcast %cst_67 : f32 to vector<2x32xf32>
    %381 = arith.addf %380, %379 : vector<2x32xf32>
    %382 = arith.divf %380, %381 : vector<2x32xf32>
    %383 = vector.extract_strided_slice %365 {offsets = [0, 64], sizes = [2, 32], strides = [1, 1]} : vector<2x96xf32> to vector<2x32xf32>
    %384 = vector.extract_strided_slice %366 {offsets = [0, 64], sizes = [2, 32], strides = [1, 1]} : vector<2x96xf32> to vector<2x32xf32>
    %385 = vector.broadcast %270 : vector<1x32xf32> to vector<2x32xf32>
    %386 = arith.addf %384, %385 : vector<2x32xf32>
    %387 = arith.mulf %374, %386 : vector<2x32xf32>
    %388 = arith.addf %383, %387 : vector<2x32xf32>
    %389 = math.tanh %388 : vector<2x32xf32>
    %cst_68 = arith.constant 1.000000e+00 : f32
    %390 = vector.broadcast %cst_68 : f32 to vector<2x32xf32>
    %391 = arith.subf %390, %382 : vector<2x32xf32>
    %392 = arith.mulf %391, %389 : vector<2x32xf32>
    %393 = arith.mulf %382, %364 : vector<2x32xf32>
    %394 = arith.addf %392, %393 : vector<2x32xf32>
    %395 = vector.extract_strided_slice %273 {offsets = [8, 0], sizes = [2, 96], strides = [1, 1]} : vector<16x96xf32> to vector<2x96xf32>
    %cst_69 = arith.constant dense<0.000000e+00> : vector<2x96xf32>
    %396 = tpu.matmul %394, %268, %cst_69 {dimension_numbers = #tpu.dot_dimension_numbers<[1], [0], [0], [1], [0, 0, 1, 1], [], []>} : vector<2x32xf32>, vector<32x96xf32>, vector<2x96xf32> -> vector<2x96xf32>
    %397 = vector.extract_strided_slice %395 {offsets = [0, 0], sizes = [2, 32], strides = [1, 1]} : vector<2x96xf32> to vector<2x32xf32>
    %398 = vector.extract_strided_slice %396 {offsets = [0, 0], sizes = [2, 32], strides = [1, 1]} : vector<2x96xf32> to vector<2x32xf32>
    %399 = arith.addf %397, %398 : vector<2x32xf32>
    %400 = arith.negf %399 : vector<2x32xf32>
    %401 = math.exp %400 : vector<2x32xf32>
    %cst_70 = arith.constant 1.000000e+00 : f32
    %402 = vector.broadcast %cst_70 : f32 to vector<2x32xf32>
    %403 = arith.addf %402, %401 : vector<2x32xf32>
    %404 = arith.divf %402, %403 : vector<2x32xf32>
    %405 = vector.extract_strided_slice %395 {offsets = [0, 32], sizes = [2, 32], strides = [1, 1]} : vector<2x96xf32> to vector<2x32xf32>
    %406 = vector.extract_strided_slice %396 {offsets = [0, 32], sizes = [2, 32], strides = [1, 1]} : vector<2x96xf32> to vector<2x32xf32>
    %407 = arith.addf %405, %406 : vector<2x32xf32>
    %408 = arith.negf %407 : vector<2x32xf32>
    %409 = math.exp %408 : vector<2x32xf32>
    %cst_71 = arith.constant 1.000000e+00 : f32
    %410 = vector.broadcast %cst_71 : f32 to vector<2x32xf32>
    %411 = arith.addf %410, %409 : vector<2x32xf32>
    %412 = arith.divf %410, %411 : vector<2x32xf32>
    %413 = vector.extract_strided_slice %395 {offsets = [0, 64], sizes = [2, 32], strides = [1, 1]} : vector<2x96xf32> to vector<2x32xf32>
    %414 = vector.extract_strided_slice %396 {offsets = [0, 64], sizes = [2, 32], strides = [1, 1]} : vector<2x96xf32> to vector<2x32xf32>
    %415 = vector.broadcast %270 : vector<1x32xf32> to vector<2x32xf32>
    %416 = arith.addf %414, %415 : vector<2x32xf32>
    %417 = arith.mulf %404, %416 : vector<2x32xf32>
    %418 = arith.addf %413, %417 : vector<2x32xf32>
    %419 = math.tanh %418 : vector<2x32xf32>
    %cst_72 = arith.constant 1.000000e+00 : f32
    %420 = vector.broadcast %cst_72 : f32 to vector<2x32xf32>
    %421 = arith.subf %420, %412 : vector<2x32xf32>
    %422 = arith.mulf %421, %419 : vector<2x32xf32>
    %423 = arith.mulf %412, %394 : vector<2x32xf32>
    %424 = arith.addf %422, %423 : vector<2x32xf32>
    %425 = vector.extract_strided_slice %273 {offsets = [10, 0], sizes = [2, 96], strides = [1, 1]} : vector<16x96xf32> to vector<2x96xf32>
    %cst_73 = arith.constant dense<0.000000e+00> : vector<2x96xf32>
    %426 = tpu.matmul %424, %268, %cst_73 {dimension_numbers = #tpu.dot_dimension_numbers<[1], [0], [0], [1], [0, 0, 1, 1], [], []>} : vector<2x32xf32>, vector<32x96xf32>, vector<2x96xf32> -> vector<2x96xf32>
    %427 = vector.extract_strided_slice %425 {offsets = [0, 0], sizes = [2, 32], strides = [1, 1]} : vector<2x96xf32> to vector<2x32xf32>
    %428 = vector.extract_strided_slice %426 {offsets = [0, 0], sizes = [2, 32], strides = [1, 1]} : vector<2x96xf32> to vector<2x32xf32>
    %429 = arith.addf %427, %428 : vector<2x32xf32>
    %430 = arith.negf %429 : vector<2x32xf32>
    %431 = math.exp %430 : vector<2x32xf32>
    %cst_74 = arith.constant 1.000000e+00 : f32
    %432 = vector.broadcast %cst_74 : f32 to vector<2x32xf32>
    %433 = arith.addf %432, %431 : vector<2x32xf32>
    %434 = arith.divf %432, %433 : vector<2x32xf32>
    %435 = vector.extract_strided_slice %425 {offsets = [0, 32], sizes = [2, 32], strides = [1, 1]} : vector<2x96xf32> to vector<2x32xf32>
    %436 = vector.extract_strided_slice %426 {offsets = [0, 32], sizes = [2, 32], strides = [1, 1]} : vector<2x96xf32> to vector<2x32xf32>
    %437 = arith.addf %435, %436 : vector<2x32xf32>
    %438 = arith.negf %437 : vector<2x32xf32>
    %439 = math.exp %438 : vector<2x32xf32>
    %cst_75 = arith.constant 1.000000e+00 : f32
    %440 = vector.broadcast %cst_75 : f32 to vector<2x32xf32>
    %441 = arith.addf %440, %439 : vector<2x32xf32>
    %442 = arith.divf %440, %441 : vector<2x32xf32>
    %443 = vector.extract_strided_slice %425 {offsets = [0, 64], sizes = [2, 32], strides = [1, 1]} : vector<2x96xf32> to vector<2x32xf32>
    %444 = vector.extract_strided_slice %426 {offsets = [0, 64], sizes = [2, 32], strides = [1, 1]} : vector<2x96xf32> to vector<2x32xf32>
    %445 = vector.broadcast %270 : vector<1x32xf32> to vector<2x32xf32>
    %446 = arith.addf %444, %445 : vector<2x32xf32>
    %447 = arith.mulf %434, %446 : vector<2x32xf32>
    %448 = arith.addf %443, %447 : vector<2x32xf32>
    %449 = math.tanh %448 : vector<2x32xf32>
    %cst_76 = arith.constant 1.000000e+00 : f32
    %450 = vector.broadcast %cst_76 : f32 to vector<2x32xf32>
    %451 = arith.subf %450, %442 : vector<2x32xf32>
    %452 = arith.mulf %451, %449 : vector<2x32xf32>
    %453 = arith.mulf %442, %424 : vector<2x32xf32>
    %454 = arith.addf %452, %453 : vector<2x32xf32>
    %455 = vector.extract_strided_slice %273 {offsets = [12, 0], sizes = [2, 96], strides = [1, 1]} : vector<16x96xf32> to vector<2x96xf32>
    %cst_77 = arith.constant dense<0.000000e+00> : vector<2x96xf32>
    %456 = tpu.matmul %454, %268, %cst_77 {dimension_numbers = #tpu.dot_dimension_numbers<[1], [0], [0], [1], [0, 0, 1, 1], [], []>} : vector<2x32xf32>, vector<32x96xf32>, vector<2x96xf32> -> vector<2x96xf32>
    %457 = vector.extract_strided_slice %455 {offsets = [0, 0], sizes = [2, 32], strides = [1, 1]} : vector<2x96xf32> to vector<2x32xf32>
    %458 = vector.extract_strided_slice %456 {offsets = [0, 0], sizes = [2, 32], strides = [1, 1]} : vector<2x96xf32> to vector<2x32xf32>
    %459 = arith.addf %457, %458 : vector<2x32xf32>
    %460 = arith.negf %459 : vector<2x32xf32>
    %461 = math.exp %460 : vector<2x32xf32>
    %cst_78 = arith.constant 1.000000e+00 : f32
    %462 = vector.broadcast %cst_78 : f32 to vector<2x32xf32>
    %463 = arith.addf %462, %461 : vector<2x32xf32>
    %464 = arith.divf %462, %463 : vector<2x32xf32>
    %465 = vector.extract_strided_slice %455 {offsets = [0, 32], sizes = [2, 32], strides = [1, 1]} : vector<2x96xf32> to vector<2x32xf32>
    %466 = vector.extract_strided_slice %456 {offsets = [0, 32], sizes = [2, 32], strides = [1, 1]} : vector<2x96xf32> to vector<2x32xf32>
    %467 = arith.addf %465, %466 : vector<2x32xf32>
    %468 = arith.negf %467 : vector<2x32xf32>
    %469 = math.exp %468 : vector<2x32xf32>
    %cst_79 = arith.constant 1.000000e+00 : f32
    %470 = vector.broadcast %cst_79 : f32 to vector<2x32xf32>
    %471 = arith.addf %470, %469 : vector<2x32xf32>
    %472 = arith.divf %470, %471 : vector<2x32xf32>
    %473 = vector.extract_strided_slice %455 {offsets = [0, 64], sizes = [2, 32], strides = [1, 1]} : vector<2x96xf32> to vector<2x32xf32>
    %474 = vector.extract_strided_slice %456 {offsets = [0, 64], sizes = [2, 32], strides = [1, 1]} : vector<2x96xf32> to vector<2x32xf32>
    %475 = vector.broadcast %270 : vector<1x32xf32> to vector<2x32xf32>
    %476 = arith.addf %474, %475 : vector<2x32xf32>
    %477 = arith.mulf %464, %476 : vector<2x32xf32>
    %478 = arith.addf %473, %477 : vector<2x32xf32>
    %479 = math.tanh %478 : vector<2x32xf32>
    %cst_80 = arith.constant 1.000000e+00 : f32
    %480 = vector.broadcast %cst_80 : f32 to vector<2x32xf32>
    %481 = arith.subf %480, %472 : vector<2x32xf32>
    %482 = arith.mulf %481, %479 : vector<2x32xf32>
    %483 = arith.mulf %472, %454 : vector<2x32xf32>
    %484 = arith.addf %482, %483 : vector<2x32xf32>
    %485 = vector.extract_strided_slice %273 {offsets = [14, 0], sizes = [2, 96], strides = [1, 1]} : vector<16x96xf32> to vector<2x96xf32>
    %cst_81 = arith.constant dense<0.000000e+00> : vector<2x96xf32>
    %486 = tpu.matmul %484, %268, %cst_81 {dimension_numbers = #tpu.dot_dimension_numbers<[1], [0], [0], [1], [0, 0, 1, 1], [], []>} : vector<2x32xf32>, vector<32x96xf32>, vector<2x96xf32> -> vector<2x96xf32>
    %487 = vector.extract_strided_slice %485 {offsets = [0, 0], sizes = [2, 32], strides = [1, 1]} : vector<2x96xf32> to vector<2x32xf32>
    %488 = vector.extract_strided_slice %486 {offsets = [0, 0], sizes = [2, 32], strides = [1, 1]} : vector<2x96xf32> to vector<2x32xf32>
    %489 = arith.addf %487, %488 : vector<2x32xf32>
    %490 = arith.negf %489 : vector<2x32xf32>
    %491 = math.exp %490 : vector<2x32xf32>
    %cst_82 = arith.constant 1.000000e+00 : f32
    %492 = vector.broadcast %cst_82 : f32 to vector<2x32xf32>
    %493 = arith.addf %492, %491 : vector<2x32xf32>
    %494 = arith.divf %492, %493 : vector<2x32xf32>
    %495 = vector.extract_strided_slice %485 {offsets = [0, 32], sizes = [2, 32], strides = [1, 1]} : vector<2x96xf32> to vector<2x32xf32>
    %496 = vector.extract_strided_slice %486 {offsets = [0, 32], sizes = [2, 32], strides = [1, 1]} : vector<2x96xf32> to vector<2x32xf32>
    %497 = arith.addf %495, %496 : vector<2x32xf32>
    %498 = arith.negf %497 : vector<2x32xf32>
    %499 = math.exp %498 : vector<2x32xf32>
    %cst_83 = arith.constant 1.000000e+00 : f32
    %500 = vector.broadcast %cst_83 : f32 to vector<2x32xf32>
    %501 = arith.addf %500, %499 : vector<2x32xf32>
    %502 = arith.divf %500, %501 : vector<2x32xf32>
    %503 = vector.extract_strided_slice %485 {offsets = [0, 64], sizes = [2, 32], strides = [1, 1]} : vector<2x96xf32> to vector<2x32xf32>
    %504 = vector.extract_strided_slice %486 {offsets = [0, 64], sizes = [2, 32], strides = [1, 1]} : vector<2x96xf32> to vector<2x32xf32>
    %505 = vector.broadcast %270 : vector<1x32xf32> to vector<2x32xf32>
    %506 = arith.addf %504, %505 : vector<2x32xf32>
    %507 = arith.mulf %494, %506 : vector<2x32xf32>
    %508 = arith.addf %503, %507 : vector<2x32xf32>
    %509 = math.tanh %508 : vector<2x32xf32>
    %cst_84 = arith.constant 1.000000e+00 : f32
    %510 = vector.broadcast %cst_84 : f32 to vector<2x32xf32>
    %511 = arith.subf %510, %502 : vector<2x32xf32>
    %512 = arith.mulf %511, %509 : vector<2x32xf32>
    %513 = arith.mulf %502, %484 : vector<2x32xf32>
    %514 = arith.addf %512, %513 : vector<2x32xf32>
    %515 = tpu.concatenate %304, %334, %364, %394, %424, %454, %484, %514 in 0 : vector<2x32xf32>, vector<2x32xf32>, vector<2x32xf32>, vector<2x32xf32>, vector<2x32xf32>, vector<2x32xf32>, vector<2x32xf32>, vector<2x32xf32> -> vector<16x32xf32>
    %c0_85 = arith.constant 0 : index
    %c0_86 = arith.constant 0 : index
    %516 = vector.load %arg9[%c0_85, %c0_86] : memref<32x120xf32, #tpu.memory_space<vmem>>, vector<32x120xf32>
    %cst_87 = arith.constant dense<0.000000e+00> : vector<16x120xf32>
    %517 = tpu.matmul %515, %516, %cst_87 {dimension_numbers = #tpu.dot_dimension_numbers<[1], [0], [0], [1], [0, 0, 1, 1], [], []>} : vector<16x32xf32>, vector<32x120xf32>, vector<16x120xf32> -> vector<16x120xf32>
    %c0_88 = arith.constant 0 : index
    %c0_89 = arith.constant 0 : index
    %518 = vector.load %arg10[%c0_88, %c0_89] : memref<1x120xf32, #tpu.memory_space<vmem>>, vector<1x120xf32>
    %519 = vector.broadcast %518 : vector<1x120xf32> to vector<16x120xf32>
    %520 = arith.addf %517, %519 : vector<16x120xf32>
    %cst_90 = arith.constant 0.000000e+00 : f32
    %521 = vector.broadcast %cst_90 : f32 to vector<16x120xf32>
    %522 = arith.maximumf %520, %521 : vector<16x120xf32>
    %c0_91 = arith.constant 0 : index
    %c0_92 = arith.constant 0 : index
    %523 = vector.load %arg11[%c0_91, %c0_92] : memref<120x80xf32, #tpu.memory_space<vmem>>, vector<120x80xf32>
    %cst_93 = arith.constant dense<0.000000e+00> : vector<16x80xf32>
    %524 = tpu.matmul %522, %523, %cst_93 {dimension_numbers = #tpu.dot_dimension_numbers<[1], [0], [0], [1], [0, 0, 1, 1], [], []>} : vector<16x120xf32>, vector<120x80xf32>, vector<16x80xf32> -> vector<16x80xf32>
    %c0_94 = arith.constant 0 : index
    %c0_95 = arith.constant 0 : index
    %525 = vector.load %arg12[%c0_94, %c0_95] : memref<1x80xf32, #tpu.memory_space<vmem>>, vector<1x80xf32>
    %526 = vector.broadcast %525 : vector<1x80xf32> to vector<16x80xf32>
    %527 = arith.addf %524, %526 : vector<16x80xf32>
    %cst_96 = arith.constant 0.000000e+00 : f32
    %528 = vector.broadcast %cst_96 : f32 to vector<16x80xf32>
    %529 = arith.maximumf %527, %528 : vector<16x80xf32>
    %c0_97 = arith.constant 0 : index
    %c0_98 = arith.constant 0 : index
    %530 = vector.load %arg13[%c0_97, %c0_98] : memref<80x3xf32, #tpu.memory_space<vmem>>, vector<80x3xf32>
    %cst_99 = arith.constant dense<0.000000e+00> : vector<16x3xf32>
    %531 = tpu.matmul %529, %530, %cst_99 {dimension_numbers = #tpu.dot_dimension_numbers<[1], [0], [0], [1], [0, 0, 1, 1], [], []>} : vector<16x80xf32>, vector<80x3xf32>, vector<16x3xf32> -> vector<16x3xf32>
    %c0_100 = arith.constant 0 : index
    %c0_101 = arith.constant 0 : index
    %532 = vector.load %arg14[%c0_100, %c0_101] : memref<1x3xf32, #tpu.memory_space<vmem>>, vector<1x3xf32>
    %533 = vector.broadcast %532 : vector<1x3xf32> to vector<16x3xf32>
    %534 = arith.addf %531, %533 : vector<16x3xf32>
    %535 = vector.shape_cast %534 : vector<16x3xf32> to vector<8x2x3xf32>
    %536 = vector.extract_strided_slice %535 {offsets = [0, 0, 0], sizes = [8, 1, 3], strides = [1, 1, 1]} : vector<8x2x3xf32> to vector<8x1x3xf32>
    %537 = vector.shape_cast %536 : vector<8x1x3xf32> to vector<8x3xf32>
    %c0_102 = arith.constant 0 : index
    %c0_103 = arith.constant 0 : index
    %c0_104 = arith.constant 0 : index
    %538 = vector.load %arg15[%c0_102, %c0_103, %c0_104] : memref<2x8x3xf32, #tpu.memory_space<vmem>>, vector<1x8x3xf32>
    %539 = vector.shape_cast %538 : vector<1x8x3xf32> to vector<8x3xf32>
    %540 = vector.shape_cast %537 : vector<8x3xf32> to vector<1x8x3xf32>
    tpu.vector_store %arg15[%c0_102, %c0_103, %c0_104], %540 {strides = array<i32>} : memref<2x8x3xf32, #tpu.memory_space<vmem>>, vector<1x8x3xf32>,
    %541 = vector.extract_strided_slice %535 {offsets = [0, 1, 0], sizes = [8, 1, 3], strides = [1, 1, 1]} : vector<8x2x3xf32> to vector<8x1x3xf32>
    %542 = vector.shape_cast %541 : vector<8x1x3xf32> to vector<8x3xf32>
    %c1 = arith.constant 1 : index
    %c0_105 = arith.constant 0 : index
    %c0_106 = arith.constant 0 : index
    %543 = vector.load %arg15[%c1, %c0_105, %c0_106] : memref<2x8x3xf32, #tpu.memory_space<vmem>>, vector<1x8x3xf32>
    %544 = vector.shape_cast %543 : vector<1x8x3xf32> to vector<8x3xf32>
    %545 = vector.shape_cast %542 : vector<8x3xf32> to vector<1x8x3xf32>
    tpu.vector_store %arg15[%c1, %c0_105, %c0_106], %545 {strides = array<i32>} : memref<2x8x3xf32, #tpu.memory_space<vmem>>, vector<1x8x3xf32>,
    return
  }
}

</mosaic_0001>

<bundles_post_ra>
// kernel: tpu_custom_call.1
= control target key start
LH: loop header
LB: loop body
LE: loop exit
PB: predicated region body
PF: predicated region fallthrough
CT: control target
= control target key end

     0   :  { %vm92_vm0 = vcmask 1045504   ;;  %vm55_vm1 = vcmask 1041409   ;;  %vm60_vm2 = vcmask 1043459   ;;  %v3162_v0 = vmov 0.0|0.0   ;;  %s3745_s2 = inlined_call_operand.vmem [shape: f32[32,96], index: 2, kind: input, shape index: {}]   ;;  %s3746_s1 = inlined_call_operand.vmem [shape: f32[6,96], index: 1, kind: input, shape index: {}]   ;;  %s3747_s0 = inlined_call_operand.vmem [shape: f32[2,8,6], index: 0, kind: input, shape index: {}]   ;;  %s3748_s4 = inlined_call_operand.vmem [shape: f32[1,32], index: 4, kind: input, shape index: {}]   ;;  %s3749_s3 = inlined_call_operand.vmem [shape: f32[1,96], index: 3, kind: input, shape index: {}]   ;;  %s3750_s6 = inlined_call_operand.vmem [shape: f32[32,96], index: 6, kind: input, shape index: {}]   ;;  %s3751_s5 = inlined_call_operand.vmem [shape: f32[32,96], index: 5, kind: input, shape index: {}]   ;;  %s3752_s8 = inlined_call_operand.vmem [shape: f32[1,32], index: 8, kind: input, shape index: {}]   ;;  %s3753_s7 = inlined_call_operand.vmem [shape: f32[1,96], index: 7, kind: input, shape index: {}]   ;;  %s3754_s9 = inlined_call_operand.vmem [shape: f32[32,120], index: 9, kind: input, shape index: {}]   ;;  %s3755_s11 = inlined_call_operand.vmem [shape: f32[120,80], index: 11, kind: input, shape index: {}]   ;;  %s3756_s13 = inlined_call_operand.vmem [shape: f32[80,3], index: 13, kind: input, shape index: {}]   ;;  %s3757_s10 = inlined_call_operand.vmem [shape: f32[1,120], index: 10, kind: input, shape index: {}]   ;;  %s3758_s12 = inlined_call_operand.vmem [shape: f32[1,80], index: 12, kind: input, shape index: {}]   ;;  %s3759_s14 = inlined_call_operand.vmem [shape: f32[1,3], index: 14, kind: input, shape index: {}]   ;;  %s3760_s15 = inlined_call_operand.vmem [shape: f32[2,8,3], index: 15, kind: output, shape index: {}]  }
   0x1   :  { %2900 = vmatprep.subr.bf16.mxu1 %v3162_v0  ;;  %v98_v1 = vld [vmem:[%s3745_s2] sm:$0xff]  ;;  %v99_v2 = vld [vmem:[%s3745_s2 + $0x8] sm:$0xff]  ;;  %vm65_vm3 = vcmask 1045509   ;;  %vm70_vm4 = vcmask 1047559   ;;  %vm88_vm5 = vcmask 1041408   ;;  %vm90_vm6 = vcmask 1043456  }
   0x2   :  { %v97_v3 = vld [vmem:[%s3746_s1] sm:$0x3f]  ;;  %v3258_v4 = vpack.c.bf16 %v99_v2, %v98_v1  ;;  %v51_v6 = vld [vmem:[%s3747_s0 + $0x8] sm:$0xff]  ;;  %vm110_vm7 = vcmask 48128   ;;  %v100_v7 = vld [vmem:[%s3745_s2 + $0x10] sm:$0xff]  ;;  %vm3164_vm8 = vmmov 0  }
   0x3   :  { %2641 = vmatprep.subr.msk.mxu0 %vm92_vm0, %v97_v3  ;;  %v50_v5 = vld [vmem:[%s3747_s0] sm:$0xff]  ;;  %v54_v8 = vrot.slane %v51_v6, 7  ;;  %v59_v10 = vrot.slane %v51_v6, 6  ;;  %v101_v12 = vld [vmem:[%s3745_s2 + $0x18] sm:$0xff]  ;;  %v64_v13 = vrot.slane %v51_v6, 5  ;;  %v69_v15 = vrot.slane %v51_v6, 4 }
   0x4   :  { %2642 = vmatpush3.msk.msra.mxu0 %vm92_vm0, %v97_v3  ;;  %v58_v9 = vrot.slane %v50_v5, 7  ;;  %v63_v11 = vrot.slane %v50_v5, 6  ;;  %2902 = vmatpush3.bf16.msra.mxu1 %v3258_v4  ;;  %v68_v14 = vrot.slane %v50_v5, 5  ;;  %v3275_v16 = vpack.c.bf16 %v101_v12, %v100_v7  ;;  %v2472_v17 = vld [vmem:[%s3748_s4] ss:$0 sm:$0xff]  ;;  %s3163_s2 = smov 64  }
   0x5   :  { %2906 = vmatprep.subr.bf16.mxu0 %v3162_v0  ;;  %2903 = vmatprep.subr.bf16.mxu1 %v3162_v0  ;;  %v56_v18 = vsel %vm55_vm1, %v54_v8, %v50_v5  ;;  %v73_v20 = vrot.slane %v50_v5, 4  ;;  %v74_v21 = vrot.slane %v51_v6, 3  ;;  %v77_v25 = vrot.slane %v50_v5, 3  ;;  %v2467_v45 = vld [vmem:[%s3749_s3] ss:$0 sm:$0xff]  ;;  %s3166_s3 = smov 96  }
   0x6   :  { %v61_v19 = vsel %vm60_vm2, %v59_v10, %v58_v9  ;;  %281 = vrot.lane.b32.xlu0 %v2472_v17, %s3163_s2  ;;  %v66_v22 = vsel %vm65_vm3, %v64_v13, %v63_v11  ;;  %v71_v23 = vsel %vm70_vm4, %v69_v15, %v68_v14  ;;  %v78_v28 = vrot.slane %v51_v6, 2 }
   0x7   :  { %v89_v24 = vsel %vm88_vm5, %v56_v18, %v61_v19  ;;  %v75_v27 = vsel %vm55_vm1, %v74_v21, %v73_v20  ;;  %v81_v29 = vrot.slane %v50_v5, 2  ;;  %v82_v31 = vrot.slane %v51_v6, 1 }
   0x8   :  { %v91_v26 = vsel %vm90_vm6, %v89_v24, %v66_v22  ;;  %2905 = vmatpush3.bf16.msra.mxu1 %v3275_v16  ;;  %v85_v32 = vrot.slane %v50_v5, 1  ;;  %v79_v33 = vsel %vm60_vm2, %v78_v28, %v77_v25  ;;  %v3165_v37 = vmov 0.0  }
   0x9   :  { %v93_v30 = vsel %vm92_vm0, %v91_v26, %v71_v23  ;;  %2912 = vmatprep.subr.bf16.mxu1 %v3162_v0  ;;  %v83_v34 = vsel %vm65_vm3, %v82_v31, %v81_v29  ;;  %v94_v36 = vsel %vm88_vm5, %v75_v27, %v79_v33  ;;  %2654 = vmatprep.mubr.msk.f32.mxu1 %vm3164_vm8, %v3165_v37  ;;  %vm195_vm9 = vcmask 261120  }
   0xa   :  { %2643 = vmatprep.mubr.msk.f32.mxu0 %vm110_vm7, %v93_v30  ;;  %v86_v35 = vsel %vm70_vm4, %v51_v6, %v85_v32  ;;  %v95_v38 = vsel %vm90_vm6, %v94_v36, %v83_v34  ;;  %vm2154_vm10 = vcmask 982016   ;;  %vm2255_vm11 = vcmask 654336  }
   0xb   :  { %2655 = vmatmul.mubr.f32.vlgmr.msra.gmra.mrb[0].mxu1 %v3165_v37  ;;  %v96_v39 = vsel %vm92_vm0, %v95_v38, %v86_v35  ;;  %vm2461_vm12 = vcmask 16384   ;;  %vm2406_vm13 = vcmask 1042434   ;;  %vm2409_vm14 = vcmask 1044484  }
   0xc   :  { %2914 = vmatpush3.bf16.msra.mxu1 %v3258_v4  ;;  %2676 = vmatprep.mubr.msk.f32.mxu1 %vm3164_vm8, %v3165_v37  ;;  %vm2412_vm15 = vcmask 1046534  }
   0xd   :  { %2644 = vmatmul.mubr.msk.f32.vlgmr.msra.gmra.mrb[0].mxu0 %vm110_vm7, %v96_v39  ;;  %2915 = vmatprep.subr.bf16.mxu1 %v3162_v0 }
   0xe   :  { %2908 = vmatpush3.bf16.msra.mxu0 %v3258_v4  ;;  %2665 = vmatprep.mubr.msk.f32.mxu0 %vm3164_vm8, %v3165_v37 }
   0xf   :  { %2909 = vmatprep.subr.bf16.mxu0 %v3162_v0 }
  0x10   :  { %2917 = vmatpush3.bf16.msra.mxu1 %v3275_v16 }
  0x11   :  { %2924 = vmatprep.subr.bf16.mxu1 %v3162_v0 }
  0x12   :  { %2911 = vmatpush3.bf16.msra.mxu0 %v3275_v16 }
  0x13   :  { %2918 = vmatprep.subr.bf16.mxu0 %v3162_v0 }
  0x78   :  { %v3316_v40 = vpop.permute.xlu0 %281 }
  0xde   :  { %v265_v41 = vpop.f32.mrb[0].mxu1 }
  0xdf   :  { %v284_v42 = vadd.f32 %v3316_v40, %v265_v41  ;;  %v2656_v43 = vpop.f32.mrb[1].mxu1 }
  0xe0   :  { %v2645_v44 = vpop.f32.mrb[0].mxu0 }
  0xe1   :  { %v3322_v46 = vadd.f32 %v2645_v44, %v2467_v45  ;;  %v186_v47 = vpop.f32.mrb[1].mxu0  ;;  %286 = vrot.lane.b32.xlu0 %v284_v42, %s3163_s2 }
  0xe2   :  { %v3325_v48 = vadd.f32 %v2467_v45, %v186_v47 }
  0xe4   :  { %v269_v49 = vadd.f32 %v265_v41, %v3325_v48 }
  0xe6   :  { %v2471_v50 = vmul.f32 -1.442695, %v269_v49 }
  0xe8   :  { %3066 = vpow2.f32 %v2471_v50 }
  0xf2   :  { %v3067_v51 = vpop.eup %3066 }
  0xf3   :  { %v273_v52 = vadd.f32 1.0, %v3067_v51 }
  0xf5   :  { %3068 = vrcp.f32 %v273_v52 }
  0xff   :  { %v3069_v53 = vpop.eup %3068 }
 0x100   :  { %v296_v59 = vsub.f32 1.0, %v3069_v53  ;;  %v302_v61 = vmul.f32 0.0, %v3069_v53 }
 0x153   :  { %v287_v54 = vpop.permute.xlu0 %286 }
 0x154   :  { %v289_v55 = vmul.f32 %v3069_v53, %v287_v54 }
 0x156   :  { %291 = vrot.lane.b32.xlu1 %v289_v55, %s3163_s2 }
 0x1c8   :  { %v292_v56 = vpop.permute.xlu1 %291 }
 0x1c9   :  { %v294_v57 = vadd.f32 %v292_v56, %v3325_v48 }
 0x1cb   :  { %3070 = vtanh.f32 %v294_v57 }
 0x1d5   :  { %v3071_v58 = vpop.eup %3070 }
 0x1d6   :  { %298 = vrot.lane.b32.xlu1 %v3071_v58, %s3166_s3 }
 0x248   :  { %v299_v60 = vpop.permute.xlu1 %298 }
 0x249   :  { %v301_v62 = vmul.f32 %v299_v60, %v296_v59 }
 0x24b   :  { %v3331_v63 = vadd.f32 %v302_v61, %v301_v62 }
 0x24d   :  { %305 = vrot.lane.b32.xlu0 %v3331_v63, %s3166_s3  ;;  %v408_v20 = vrot.slane %v3331_v63, 6 }
 0x2bf   :  { %v306_v1 = vpop.permute.xlu0 %305 }
 0x2c0   :  { %2666 = vmatmul.mubr.msk.f32.vlgmr.msra.gmra.mrb[2].mxu0 %vm195_vm9, %v306_v1 }
 0x2c1   :  { %2920 = vmatpush3.bf16.msra.mxu0 %v3258_v4  ;;  %2687 = vmatprep.mubr.msk.f32.mxu0 %vm3164_vm8, %v3165_v37 }
 0x2c2   :  { %2921 = vmatprep.subr.bf16.mxu0 %v3162_v0 }
 0x2c5   :  { %2923 = vmatpush3.bf16.msra.mxu0 %v3275_v16 }
 0x2c6   :  { %2930 = vmatprep.subr.bf16.mxu0 %v3162_v0 }
 0x393   :  { %v375_v2 = vpop.f32.mrb[2].mxu0 }
 0x394   :  { %v389_v3 = vadd.f32 %v375_v2, %v3316_v40  ;;  %v2667_v5 = vpop.f32.mrb[3].mxu0  ;;  %v380_v7 = vrot.slane %v375_v2, 6 }
 0x396   :  { %v391_v6 = vrot.slane %v389_v3, 6  ;;  %v382_v8 = vadd.f32 %v380_v7, %v3325_v48 }
 0x398   :  { %392 = vrot.lane.b32.xlu1 %v391_v6, %s3163_s2  ;;  %v2474_v9 = vmul.f32 -1.442695, %v382_v8 }
 0x39a   :  { %3072 = vpow2.f32 %v2474_v9 }
 0x3a4   :  { %v3073_v10 = vpop.eup %3072 }
 0x3a5   :  { %v386_v11 = vadd.f32 1.0, %v3073_v10 }
 0x3a7   :  { %3074 = vrcp.f32 %v386_v11 }
 0x3b1   :  { %v3075_v12 = vpop.eup %3074 }
 0x3b2   :  { %v402_v19 = vsub.f32 1.0, %v3075_v12  ;;  %v410_v23 = vmul.f32 %v3075_v12, %v408_v20 }
 0x40a   :  { %v393_v13 = vpop.permute.xlu1 %392 }
 0x40b   :  { %v395_v14 = vmul.f32 %v3075_v12, %v393_v13 }
 0x40d   :  { %397 = vrot.lane.b32.xlu0 %v395_v14, %s3163_s2 }
 0x47f   :  { %v398_v15 = vpop.permute.xlu0 %397 }
 0x480   :  { %v400_v17 = vadd.f32 %v398_v15, %v3325_v48 }
 0x482   :  { %3076 = vtanh.f32 %v400_v17 }
 0x48c   :  { %v3077_v18 = vpop.eup %3076 }
 0x48d   :  { %404 = vrot.lane.b32.xlu1 %v3077_v18, %s3166_s3 }
 0x4ff   :  { %v405_v21 = vpop.permute.xlu1 %404 }
 0x500   :  { %v407_v22 = vmul.f32 %v405_v21, %v402_v19 }
 0x502   :  { %v411_v24 = vadd.f32 %v410_v23, %v407_v22 }
 0x504   :  { %v413_v25 = vrot.slane %v411_v24, 2  ;;  %v517_v45 = vrot.slane %v411_v24, 6  ;;  %v1060_v52 = vsel %vm88_vm5, %v3331_v63, %v411_v24 }
 0x506   :  { %414 = vrot.lane.b32.xlu0 %v413_v25, %s3166_s3 }
 0x578   :  { %v415_v26 = vpop.permute.xlu0 %414 }
 0x579   :  { %2677 = vmatmul.mubr.msk.f32.vlgmr.msra.gmra.mrb[2].mxu1 %vm195_vm9, %v415_v26 }
 0x57a   :  { %2926 = vmatpush3.bf16.msra.mxu1 %v3258_v4  ;;  %2698 = vmatprep.mubr.msk.f32.mxu1 %vm3164_vm8, %v3165_v37 }
 0x57b   :  { %2927 = vmatprep.subr.bf16.mxu1 %v3162_v0 }
 0x57e   :  { %2929 = vmatpush3.bf16.msra.mxu1 %v3275_v16 }
 0x57f   :  { %2936 = vmatprep.subr.bf16.mxu1 %v3162_v0 }
 0x64c   :  { %v484_v27 = vpop.f32.mrb[2].mxu1 }
 0x64d   :  { %v498_v28 = vadd.f32 %v484_v27, %v3316_v40  ;;  %v2678_v29 = vpop.f32.mrb[3].mxu1  ;;  %v489_v31 = vrot.slane %v484_v27, 4 }
 0x64f   :  { %v500_v30 = vrot.slane %v498_v28, 4  ;;  %v491_v32 = vadd.f32 %v489_v31, %v3325_v48 }
 0x651   :  { %501 = vrot.lane.b32.xlu1 %v500_v30, %s3163_s2  ;;  %v2476_v33 = vmul.f32 -1.442695, %v491_v32 }
 0x653   :  { %3078 = vpow2.f32 %v2476_v33 }
 0x65d   :  { %v3079_v34 = vpop.eup %3078 }
 0x65e   :  { %v495_v35 = vadd.f32 1.0, %v3079_v34 }
 0x660   :  { %3080 = vrcp.f32 %v495_v35 }
 0x66a   :  { %v3081_v36 = vpop.eup %3080 }
 0x66b   :  { %v511_v44 = vsub.f32 1.0, %v3081_v36  ;;  %v519_v49 = vmul.f32 %v3081_v36, %v517_v45 }
 0x6c3   :  { %v502_v38 = vpop.permute.xlu1 %501 }
 0x6c4   :  { %v504_v39 = vmul.f32 %v3081_v36, %v502_v38 }
 0x6c6   :  { %506 = vrot.lane.b32.xlu0 %v504_v39, %s3163_s2 }
 0x738   :  { %v507_v41 = vpop.permute.xlu0 %506 }
 0x739   :  { %v509_v42 = vadd.f32 %v507_v41, %v3325_v48 }
 0x73b   :  { %3082 = vtanh.f32 %v509_v42 }
 0x745   :  { %v3083_v43 = vpop.eup %3082 }
 0x746   :  { %513 = vrot.lane.b32.xlu1 %v3083_v43, %s3166_s3 }
 0x7b8   :  { %v514_v47 = vpop.permute.xlu1 %513 }
 0x7b9   :  { %v516_v50 = vmul.f32 %v514_v47, %v511_v44 }
 0x7bb   :  { %v520_v51 = vadd.f32 %v519_v49, %v516_v50 }
 0x7bd   :  { %v522_v53 = vrot.slane %v520_v51, 4  ;;  %v1061_v54 = vsel %vm90_vm6, %v1060_v52, %v520_v51  ;;  %v626_v10 = vrot.slane %v520_v51, 6 }
 0x7bf   :  { %523 = vrot.lane.b32.xlu0 %v522_v53, %s3166_s3 }
 0x831   :  { %v524_v55 = vpop.permute.xlu0 %523 }
 0x832   :  { %2688 = vmatmul.mubr.msk.f32.vlgmr.msra.gmra.mrb[4].mxu0 %vm195_vm9, %v524_v55 }
 0x833   :  { %2932 = vmatpush3.bf16.msra.mxu0 %v3258_v4  ;;  %2709 = vmatprep.mubr.msk.f32.mxu0 %vm3164_vm8, %v3165_v37 }
 0x834   :  { %2933 = vmatprep.subr.bf16.mxu0 %v3162_v0 }
 0x837   :  { %2935 = vmatpush3.bf16.msra.mxu0 %v3275_v16 }
 0x838   :  { %2942 = vmatprep.subr.bf16.mxu0 %v3162_v0 }
 0x905   :  { %v593_v56 = vpop.f32.mrb[4].mxu0 }
 0x906   :  { %v607_v57 = vadd.f32 %v593_v56, %v3316_v40  ;;  %v2689_v58 = vpop.f32.mrb[5].mxu0  ;;  %v598_v60 = vrot.slane %v593_v56, 2 }
 0x908   :  { %v609_v59 = vrot.slane %v607_v57, 2  ;;  %v600_v61 = vadd.f32 %v598_v60, %v3325_v48 }
 0x90a   :  { %610 = vrot.lane.b32.xlu1 %v609_v59, %s3163_s2  ;;  %v2478_v62 = vmul.f32 -1.442695, %v600_v61 }
 0x90c   :  { %3084 = vpow2.f32 %v2478_v62 }
 0x916   :  { %v3085_v63 = vpop.eup %3084 }
 0x917   :  { %v604_v1 = vadd.f32 1.0, %v3085_v63 }
 0x919   :  { %3086 = vrcp.f32 %v604_v1 }
 0x923   :  { %v3087_v2 = vpop.eup %3086 }
 0x924   :  { %v620_v9 = vsub.f32 1.0, %v3087_v2  ;;  %v628_v12 = vmul.f32 %v3087_v2, %v626_v10 }
 0x97c   :  { %v611_v3 = vpop.permute.xlu1 %610 }
 0x97d   :  { %v613_v5 = vmul.f32 %v3087_v2, %v611_v3 }
 0x97f   :  { %615 = vrot.lane.b32.xlu0 %v613_v5, %s3163_s2 }
 0x9f1   :  { %v616_v6 = vpop.permute.xlu0 %615 }
 0x9f2   :  { %v618_v7 = vadd.f32 %v616_v6, %v3325_v48 }
 0x9f4   :  { %3088 = vtanh.f32 %v618_v7 }
 0x9fe   :  { %v3089_v8 = vpop.eup %3088 }
 0x9ff   :  { %622 = vrot.lane.b32.xlu1 %v3089_v8, %s3166_s3 }
 0xa71   :  { %v623_v11 = vpop.permute.xlu1 %622 }
 0xa72   :  { %v625_v13 = vmul.f32 %v623_v11, %v620_v9 }
 0xa74   :  { %v629_v14 = vadd.f32 %v628_v12, %v625_v13 }
 0xa76   :  { %v631_v15 = vrot.slane %v629_v14, 6  ;;  %v3381_v17 = vsel %vm92_vm0, %v1061_v54, %v629_v14 }
 0xa78   :  { %632 = vrot.lane.b32.xlu0 %v631_v15, %s3166_s3 }
 0xaea   :  { %v633_v18 = vpop.permute.xlu0 %632 }
 0xaeb   :  { %2699 = vmatmul.mubr.msk.f32.vlgmr.msra.gmra.mrb[4].mxu1 %vm195_vm9, %v633_v18 }
 0xaec   :  { %2938 = vmatpush3.bf16.msra.mxu1 %v3258_v4  ;;  %2720 = vmatprep.mubr.msk.f32.mxu1 %vm3164_vm8, %v3165_v37 }
 0xaed   :  { %2939 = vmatprep.subr.bf16.mxu1 %v3162_v0 }
 0xaf0   :  { %2941 = vmatpush3.bf16.msra.mxu1 %v3275_v16 }
 0xbbe   :  { %v702_v48 = vpop.f32.mrb[4].mxu1 }
 0xbbf   :  { %v713_v19 = vadd.f32 %v702_v48, %v3316_v40  ;;  %v2700_v20 = vpop.f32.mrb[5].mxu1  ;;  %v706_v21 = vadd.f32 %v702_v48, %v3322_v46 }
 0xbc1   :  { %715 = vrot.lane.b32.xlu1 %v713_v19, %s3163_s2  ;;  %v2480_v22 = vmul.f32 -1.442695, %v706_v21 }
 0xbc3   :  { %3090 = vpow2.f32 %v2480_v22 }
 0xbcd   :  { %v3091_v23 = vpop.eup %3090 }
 0xbce   :  { %v710_v24 = vadd.f32 1.0, %v3091_v23 }
 0xbd0   :  { %3092 = vrcp.f32 %v710_v24 }
 0xbda   :  { %v3093_v25 = vpop.eup %3092 }
 0xbdb   :  { %v725_v31 = vsub.f32 1.0, %v3093_v25  ;;  %v732_v33 = vmul.f32 %v3093_v25, %v631_v15 }
 0xc33   :  { %v716_v26 = vpop.permute.xlu1 %715 }
 0xc34   :  { %v718_v27 = vmul.f32 %v3093_v25, %v716_v26 }
 0xc36   :  { %720 = vrot.lane.b32.xlu0 %v718_v27, %s3163_s2 }
 0xca8   :  { %v721_v28 = vpop.permute.xlu0 %720 }
 0xca9   :  { %v723_v29 = vadd.f32 %v721_v28, %v3322_v46 }
 0xcab   :  { %3094 = vtanh.f32 %v723_v29 }
 0xcb5   :  { %v3095_v30 = vpop.eup %3094 }
 0xcb6   :  { %727 = vrot.lane.b32.xlu1 %v3095_v30, %s3166_s3 }
 0xd28   :  { %v728_v32 = vpop.permute.xlu1 %727 }
 0xd29   :  { %v730_v34 = vmul.f32 %v728_v32, %v725_v31 }
 0xd2b   :  { %v3396_v35 = vadd.f32 %v732_v33, %v730_v34 }
 0xd2d   :  { %735 = vrot.lane.b32.xlu0 %v3396_v35, %s3166_s3  ;;  %v838_v55 = vrot.slane %v3396_v35, 6 }
 0xd9f   :  { %v736_v36 = vpop.permute.xlu0 %735 }
 0xda0   :  { %2710 = vmatmul.mubr.msk.f32.vlgmr.msra.gmra.mrb[6].mxu0 %vm195_vm9, %v736_v36 }
 0xda1   :  { %2944 = vmatpush3.bf16.msra.mxu0 %v3258_v4  ;;  %2731 = vmatprep.mubr.msk.f32.mxu0 %vm3164_vm8, %v3165_v37 }
 0xda2   :  { %2945 = vmatprep.subr.bf16.mxu0 %v3162_v0 }
 0xda5   :  { %2947 = vmatpush3.bf16.msra.mxu0 %v3275_v16 }
 0xda6   :  { %2956 = vmatprep.subr.bf16.mxu0 %v3162_v0 }
 0xe73   :  { %v805_v38 = vpop.f32.mrb[6].mxu0 }
 0xe74   :  { %v819_v39 = vadd.f32 %v805_v38, %v3316_v40  ;;  %v2711_v41 = vpop.f32.mrb[7].mxu0  ;;  %v810_v43 = vrot.slane %v805_v38, 6 }
 0xe76   :  { %v821_v42 = vrot.slane %v819_v39, 6  ;;  %v812_v44 = vadd.f32 %v810_v43, %v3322_v46  ;;  %v1071_v43 = vld [vmem:[%s3750_s6 + $0x8] sm:$0xff] }
 0xe78   :  { %822 = vrot.lane.b32.xlu1 %v821_v42, %s3163_s2  ;;  %v2482_v4 = vmul.f32 -1.442695, %v812_v44  ;;  %v1070_v42 = vld [vmem:[%s3750_s6] sm:$0xff]  ;;  %v1072_v44 = vld [vmem:[%s3750_s6 + $0x10] sm:$0xff] }
 0xe7a   :  { %3096 = vpow2.f32 %v2482_v4  ;;  %v1066_v4 = vld [vmem:[%s3751_s5] sm:$0xff] }
 0xe84   :  { %v3097_v45 = vpop.eup %3096 }
 0xe85   :  { %v816_v47 = vadd.f32 1.0, %v3097_v45  ;;  %v1067_v45 = vld [vmem:[%s3751_s5 + $0x8] sm:$0xff] }
 0xe87   :  { %3098 = vrcp.f32 %v816_v47  ;;  %v2948_v47 = vpack.c.bf16 %v1067_v45, %v1066_v4 }
 0xe89   :  { %2949 = vmatprep.subr.bf16.mxu1 %v2948_v47 }
 0xe91   :  { %v3099_v49 = vpop.eup %3098 }
 0xe92   :  { %v832_v54 = vsub.f32 1.0, %v3099_v49  ;;  %v840_v58 = vmul.f32 %v3099_v49, %v838_v55 }
 0xeea   :  { %v823_v50 = vpop.permute.xlu1 %822 }
 0xeeb   :  { %v825_v16 = vmul.f32 %v3099_v49, %v823_v50  ;;  %v1068_v49 = vld [vmem:[%s3751_s5 + $0x10] sm:$0xff]  ;;  %v1069_v50 = vld [vmem:[%s3751_s5 + $0x18] sm:$0xff] }
 0xeed   :  { %827 = vrot.lane.b32.xlu0 %v825_v16, %s3163_s2 }
 0xf5f   :  { %v828_v51 = vpop.permute.xlu0 %827 }
 0xf60   :  { %v830_v52 = vadd.f32 %v828_v51, %v3322_v46  ;;  %v2952_v51 = vpack.c.bf16 %v1069_v50, %v1068_v49 }
 0xf62   :  { %3100 = vtanh.f32 %v830_v52 }
 0xf6c   :  { %v3101_v53 = vpop.eup %3100 }
 0xf6d   :  { %834 = vrot.lane.b32.xlu1 %v3101_v53, %s3166_s3  ;;  %v2491_v53 = vld [vmem:[%s3752_s8] ss:$0 sm:$0xff] }
 0xfdf   :  { %v835_v56 = vpop.permute.xlu1 %834 }
 0xfe0   :  { %v837_v57 = vmul.f32 %v835_v56, %v832_v54 }
 0xfe2   :  { %v841_v59 = vadd.f32 %v840_v58, %v837_v57 }
 0xfe4   :  { %v843_v60 = vrot.slane %v841_v59, 2  ;;  %v947_v18 = vrot.slane %v841_v59, 6  ;;  %v1063_v22 = vsel %vm88_vm5, %v3396_v35, %v841_v59 }
 0xfe6   :  { %844 = vrot.lane.b32.xlu0 %v843_v60, %s3166_s3 }
0x1058   :  { %v845_v61 = vpop.permute.xlu0 %844 }
0x1059   :  { %2721 = vmatmul.mubr.msk.f32.vlgmr.msra.gmra.mrb[6].mxu1 %vm195_vm9, %v845_v61 }
0x105a   :  { %2951 = vmatpush3.bf16.msra.mxu1 %v2948_v47 }
0x105b   :  { %2953 = vmatprep.subr.bf16.mxu1 %v2952_v51 }
0x105e   :  { %2955 = vmatpush3.bf16.msra.mxu1 %v2952_v51 }
0x105f   :  { %2962 = vmatprep.subr.bf16.mxu1 %v3162_v0 }
0x112c   :  { %v914_v62 = vpop.f32.mrb[6].mxu1 }
0x112d   :  { %v928_v63 = vadd.f32 %v914_v62, %v3316_v40  ;;  %v2722_v1 = vpop.f32.mrb[7].mxu1  ;;  %v919_v3 = vrot.slane %v914_v62, 4 }
0x112f   :  { %v930_v2 = vrot.slane %v928_v63, 4  ;;  %v921_v5 = vadd.f32 %v919_v3, %v3322_v46  ;;  %v2487_v3 = vld [vmem:[%s3753_s7] ss:$0 sm:$0xff] }
0x1131   :  { %931 = vrot.lane.b32.xlu1 %v930_v2, %s3163_s2  ;;  %v2484_v6 = vmul.f32 -1.442695, %v921_v5 }
0x1133   :  { %3102 = vpow2.f32 %v2484_v6 }
0x113d   :  { %v3103_v7 = vpop.eup %3102 }
0x113e   :  { %v925_v8 = vadd.f32 1.0, %v3103_v7 }
0x1140   :  { %3104 = vrcp.f32 %v925_v8 }
0x114a   :  { %v3105_v9 = vpop.eup %3104 }
0x114b   :  { %v941_v15 = vsub.f32 1.0, %v3105_v9  ;;  %v949_v19 = vmul.f32 %v3105_v9, %v947_v18 }
0x11a3   :  { %v932_v10 = vpop.permute.xlu1 %931 }
0x11a4   :  { %v934_v11 = vmul.f32 %v3105_v9, %v932_v10 }
0x11a6   :  { %936 = vrot.lane.b32.xlu0 %v934_v11, %s3163_s2 }
0x1218   :  { %v937_v12 = vpop.permute.xlu0 %936 }
0x1219   :  { %v939_v13 = vadd.f32 %v937_v12, %v3322_v46 }
0x121b   :  { %3106 = vtanh.f32 %v939_v13 }
0x1225   :  { %v3107_v14 = vpop.eup %3106 }
0x1226   :  { %943 = vrot.lane.b32.xlu1 %v3107_v14, %s3166_s3 }
0x1298   :  { %v944_v48 = vpop.permute.xlu1 %943 }
0x1299   :  { %v946_v20 = vmul.f32 %v944_v48, %v941_v15 }
0x129b   :  { %v3422_v21 = vadd.f32 %v949_v19, %v946_v20 }
0x129d   :  { %v952_v23 = vrot.slane %v3422_v21, 4  ;;  %v3429_v24 = vsel %vm90_vm6, %v1063_v22, %v3422_v21  ;;  %v1056_v55 = vrot.slane %v3422_v21, 6 }
0x129f   :  { %953 = vrot.lane.b32.xlu0 %v952_v23, %s3166_s3 }
0x1311   :  { %v954_v25 = vpop.permute.xlu0 %953 }
0x1312   :  { %2732 = vmatmul.mubr.msk.f32.vlgmr.msra.gmra.mrb[8].mxu0 %vm195_vm9, %v954_v25 }
0x1313   :  { %2753 = vmatprep.mubr.msk.f32.mxu0 %vm3164_vm8, %v3165_v37 }
0x13e5   :  { %v1023_v26 = vpop.f32.mrb[8].mxu0 }
0x13e6   :  { %v1037_v27 = vadd.f32 %v1023_v26, %v3316_v40  ;;  %v2733_v28 = vpop.f32.mrb[9].mxu0  ;;  %v1028_v30 = vrot.slane %v1023_v26, 2 }
0x13e8   :  { %v1039_v29 = vrot.slane %v1037_v27, 2  ;;  %v1030_v31 = vadd.f32 %v1028_v30, %v3322_v46 }
0x13ea   :  { %1040 = vrot.lane.b32.xlu1 %v1039_v29, %s3163_s2  ;;  %v2486_v32 = vmul.f32 -1.442695, %v1030_v31 }
0x13ec   :  { %3108 = vpow2.f32 %v2486_v32 }
0x13f6   :  { %v3109_v33 = vpop.eup %3108 }
0x13f7   :  { %v1034_v34 = vadd.f32 1.0, %v3109_v33 }
0x13f9   :  { %3110 = vrcp.f32 %v1034_v34 }
0x1403   :  { %v3111_v35 = vpop.eup %3110 }
0x1404   :  { %v1050_v54 = vsub.f32 1.0, %v3111_v35  ;;  %v1058_v57 = vmul.f32 %v3111_v35, %v1056_v55 }
0x145c   :  { %v1041_v36 = vpop.permute.xlu1 %1040 }
0x145d   :  { %v1043_v38 = vmul.f32 %v3111_v35, %v1041_v36 }
0x145f   :  { %1045 = vrot.lane.b32.xlu0 %v1043_v38, %s3163_s2 }
0x1463   :  { %1084 = vrot.lane.b32.xlu0 %v3381_v17, %s3166_s3  ;;  %v3452_v17 = vpack.c.bf16 %v1071_v43, %v1070_v42 }
0x1465   :  { %2958 = vmatpush3.bf16.msra.mxu0 %v3452_v17 }
0x1466   :  { %2959 = vmatprep.subr.bf16.mxu0 %v3162_v0 }
0x1467   :  { %1249 = vrot.lane.b32.xlu0 %v2491_v53, %s3163_s2 }
0x14d1   :  { %v1046_v40 = vpop.permute.xlu0 %1045 }
0x14d2   :  { %v1048_v39 = vadd.f32 %v1046_v40, %v3322_v46  ;;  %v1073_v46 = vld [vmem:[%s3750_s6 + $0x18] sm:$0xff] }
0x14d3   :  { %v3470_v16 = vpack.c.bf16 %v1073_v46, %v1072_v44 }
0x14d4   :  { %3112 = vtanh.f32 %v1048_v39 }
0x14d5   :  { %v1085_v41 = vpop.permute.xlu0 %1084  ;;  %2961 = vmatpush3.bf16.msra.mxu0 %v3470_v16 }
0x14d6   :  { %2742 = vmatprep.mubr.msk.f32.mxu1 %vm195_vm9, %v1085_v41  ;;  %2968 = vmatprep.subr.bf16.mxu0 %v3162_v0 }
0x14d8   :  { %2754 = vmatmul.mubr.f32.vlgmr.msra.gmra.mrb[10].mxu0 %v3165_v37 }
0x14d9   :  { %2970 = vmatpush3.bf16.msra.mxu0 %v3452_v17  ;;  %2775 = vmatprep.mubr.msk.f32.mxu0 %vm3164_vm8, %v3165_v37  ;;  %v3492_v63 = vpop.permute.xlu0 %1249 }
0x14da   :  { %2971 = vmatprep.subr.bf16.mxu0 %v3162_v0 }
0x14dd   :  { %2973 = vmatpush3.bf16.msra.mxu0 %v3470_v16 }
0x14de   :  { %v3113_v52 = vpop.eup %3112  ;;  %2980 = vmatprep.subr.bf16.mxu0 %v3162_v0 }
0x14df   :  { %1052 = vrot.lane.b32.xlu1 %v3113_v52, %s3166_s3 }
0x1551   :  { %v1053_v56 = vpop.permute.xlu1 %1052 }
0x1552   :  { %v1055_v58 = vmul.f32 %v1053_v56, %v1050_v54 }
0x1554   :  { %v1059_v59 = vadd.f32 %v1058_v57, %v1055_v58 }
0x1556   :  { %v1065_v60 = vsel %vm92_vm0, %v3429_v24, %v1059_v59 }
0x1557   :  { %1086 = vrot.lane.b32.xlu1 %v1065_v60, %s3166_s3 }
0x15ab   :  { %v1233_v61 = vpop.f32.mrb[10].mxu0 }
0x15ac   :  { %v2755_v62 = vpop.f32.mrb[11].mxu0  ;;  %v1252_v1 = vadd.f32 %v3492_v63, %v1233_v61 }
0x15ae   :  { %1254 = vrot.lane.b32.xlu1 %v1252_v1, %s3163_s2 }
0x15c9   :  { %v1087_v2 = vpop.permute.xlu1 %1086 }
0x15ca   :  { %2743 = vmatmul.mubr.msk.f32.vlgmr.msra.gmra.mrb[8].mxu1 %vm195_vm9, %v1087_v2 }
0x15cb   :  { %2964 = vmatpush3.bf16.msra.mxu1 %v3452_v17  ;;  %2764 = vmatprep.mubr.msk.f32.mxu1 %vm3164_vm8, %v3165_v37 }
0x15cc   :  { %2965 = vmatprep.subr.bf16.mxu1 %v3162_v0 }
0x15cf   :  { %2967 = vmatpush3.bf16.msra.mxu1 %v3470_v16 }
0x15d0   :  { %2974 = vmatprep.subr.bf16.mxu1 %v3162_v0 }
0x1620   :  { %v1255_v13 = vpop.permute.xlu1 %1254 }
0x169d   :  { %v2744_v5 = vpop.f32.mrb[8].mxu1 }
0x169e   :  { %v3506_v6 = vadd.f32 %v2744_v5, %v2487_v3  ;;  %v1158_v7 = vpop.f32.mrb[9].mxu1 }
0x169f   :  { %v3508_v8 = vadd.f32 %v2487_v3, %v1158_v7 }
0x16a1   :  { %v1237_v9 = vadd.f32 %v1233_v61, %v3508_v8 }
0x16a3   :  { %v2490_v10 = vmul.f32 -1.442695, %v1237_v9 }
0x16a5   :  { %3114 = vpow2.f32 %v2490_v10 }
0x16af   :  { %v3115_v11 = vpop.eup %3114 }
0x16b0   :  { %v1241_v12 = vadd.f32 1.0, %v3115_v11 }
0x16b2   :  { %3116 = vrcp.f32 %v1241_v12 }
0x16bc   :  { %v3117_v14 = vpop.eup %3116 }
0x16bd   :  { %v1257_v15 = vmul.f32 %v3117_v14, %v1255_v13  ;;  %v1264_v20 = vsub.f32 1.0, %v3117_v14  ;;  %v1270_v22 = vmul.f32 0.0, %v3117_v14 }
0x16bf   :  { %1259 = vrot.lane.b32.xlu0 %v1257_v15, %s3163_s2 }
0x1731   :  { %v1260_v18 = vpop.permute.xlu0 %1259 }
0x1732   :  { %v1262_v48 = vadd.f32 %v1260_v18, %v3508_v8 }
0x1734   :  { %3118 = vtanh.f32 %v1262_v48 }
0x173e   :  { %v3119_v19 = vpop.eup %3118 }
0x173f   :  { %1266 = vrot.lane.b32.xlu1 %v3119_v19, %s3166_s3 }
0x17b1   :  { %v1267_v21 = vpop.permute.xlu1 %1266 }
0x17b2   :  { %v1269_v23 = vmul.f32 %v1267_v21, %v1264_v20 }
0x17b4   :  { %v3514_v24 = vadd.f32 %v1270_v22, %v1269_v23 }
0x17b6   :  { %1273 = vrot.lane.b32.xlu0 %v3514_v24, %s3166_s3  ;;  %v1376_v43 = vrot.slane %v3514_v24, 6 }
0x1828   :  { %v1274_v25 = vpop.permute.xlu0 %1273 }
0x1829   :  { %2765 = vmatmul.mubr.msk.f32.vlgmr.msra.gmra.mrb[10].mxu1 %vm195_vm9, %v1274_v25 }
0x182a   :  { %2976 = vmatpush3.bf16.msra.mxu1 %v3452_v17  ;;  %2786 = vmatprep.mubr.msk.f32.mxu1 %vm3164_vm8, %v3165_v37 }
0x182b   :  { %2977 = vmatprep.subr.bf16.mxu1 %v3162_v0 }
0x182e   :  { %2979 = vmatpush3.bf16.msra.mxu1 %v3470_v16 }
0x182f   :  { %2986 = vmatprep.subr.bf16.mxu1 %v3162_v0 }
0x18fc   :  { %v1343_v26 = vpop.f32.mrb[10].mxu1 }
0x18fd   :  { %v1357_v27 = vadd.f32 %v1343_v26, %v3492_v63  ;;  %v2766_v28 = vpop.f32.mrb[11].mxu1  ;;  %v1348_v30 = vrot.slane %v1343_v26, 6 }
0x18ff   :  { %v1359_v29 = vrot.slane %v1357_v27, 6  ;;  %v1350_v31 = vadd.f32 %v1348_v30, %v3508_v8 }
0x1901   :  { %1360 = vrot.lane.b32.xlu1 %v1359_v29, %s3163_s2  ;;  %v2493_v32 = vmul.f32 -1.442695, %v1350_v31 }
0x1903   :  { %3120 = vpow2.f32 %v2493_v32 }
0x190d   :  { %v3121_v33 = vpop.eup %3120 }
0x190e   :  { %v1354_v34 = vadd.f32 1.0, %v3121_v33 }
0x1910   :  { %3122 = vrcp.f32 %v1354_v34 }
0x191a   :  { %v3123_v35 = vpop.eup %3122 }
0x191b   :  { %v1370_v42 = vsub.f32 1.0, %v3123_v35  ;;  %v1378_v4 = vmul.f32 %v3123_v35, %v1376_v43 }
0x1973   :  { %v1361_v36 = vpop.permute.xlu1 %1360 }
0x1974   :  { %v1363_v38 = vmul.f32 %v3123_v35, %v1361_v36 }
0x1976   :  { %1365 = vrot.lane.b32.xlu0 %v1363_v38, %s3163_s2 }
0x19e8   :  { %v1366_v40 = vpop.permute.xlu0 %1365 }
0x19e9   :  { %v1368_v39 = vadd.f32 %v1366_v40, %v3508_v8 }
0x19eb   :  { %3124 = vtanh.f32 %v1368_v39 }
0x19f5   :  { %v3125_v41 = vpop.eup %3124 }
0x19f6   :  { %1372 = vrot.lane.b32.xlu1 %v3125_v41, %s3166_s3 }
0x1a68   :  { %v1373_v44 = vpop.permute.xlu1 %1372 }
0x1a69   :  { %v1375_v46 = vmul.f32 %v1373_v44, %v1370_v42 }
0x1a6b   :  { %v1379_v45 = vadd.f32 %v1378_v4, %v1375_v46 }
0x1a6d   :  { %v1381_v47 = vrot.slane %v1379_v45, 2  ;;  %v1485_v5 = vrot.slane %v1379_v45, 6  ;;  %v2028_v12 = vsel %vm88_vm5, %v3514_v24, %v1379_v45 }
0x1a6f   :  { %1382 = vrot.lane.b32.xlu0 %v1381_v47, %s3166_s3 }
0x1ae1   :  { %v1383_v49 = vpop.permute.xlu0 %1382 }
0x1ae2   :  { %2776 = vmatmul.mubr.msk.f32.vlgmr.msra.gmra.mrb[12].mxu0 %vm195_vm9, %v1383_v49 }
0x1ae3   :  { %2982 = vmatpush3.bf16.msra.mxu0 %v3452_v17  ;;  %2797 = vmatprep.mubr.msk.f32.mxu0 %vm3164_vm8, %v3165_v37 }
0x1ae4   :  { %2983 = vmatprep.subr.bf16.mxu0 %v3162_v0 }
0x1ae7   :  { %2985 = vmatpush3.bf16.msra.mxu0 %v3470_v16 }
0x1ae8   :  { %2992 = vmatprep.subr.bf16.mxu0 %v3162_v0 }
0x1bb5   :  { %v1452_v50 = vpop.f32.mrb[12].mxu0 }
0x1bb6   :  { %v1466_v51 = vadd.f32 %v1452_v50, %v3492_v63  ;;  %v2777_v52 = vpop.f32.mrb[13].mxu0  ;;  %v1457_v54 = vrot.slane %v1452_v50, 4 }
0x1bb8   :  { %v1468_v53 = vrot.slane %v1466_v51, 4  ;;  %v1459_v55 = vadd.f32 %v1457_v54, %v3508_v8 }
0x1bba   :  { %1469 = vrot.lane.b32.xlu1 %v1468_v53, %s3163_s2  ;;  %v2495_v56 = vmul.f32 -1.442695, %v1459_v55 }
0x1bbc   :  { %3126 = vpow2.f32 %v2495_v56 }
0x1bc6   :  { %v3127_v57 = vpop.eup %3126 }
0x1bc7   :  { %v1463_v58 = vadd.f32 1.0, %v3127_v57 }
0x1bc9   :  { %3128 = vrcp.f32 %v1463_v58 }
0x1bd3   :  { %v3129_v59 = vpop.eup %3128 }
0x1bd4   :  { %v1479_v3 = vsub.f32 1.0, %v3129_v59  ;;  %v1487_v9 = vmul.f32 %v3129_v59, %v1485_v5 }
0x1c2c   :  { %v1470_v60 = vpop.permute.xlu1 %1469 }
0x1c2d   :  { %v1472_v61 = vmul.f32 %v3129_v59, %v1470_v60 }
0x1c2f   :  { %1474 = vrot.lane.b32.xlu0 %v1472_v61, %s3163_s2 }
0x1ca1   :  { %v1475_v62 = vpop.permute.xlu0 %1474 }
0x1ca2   :  { %v1477_v1 = vadd.f32 %v1475_v62, %v3508_v8 }
0x1ca4   :  { %3130 = vtanh.f32 %v1477_v1 }
0x1cae   :  { %v3131_v2 = vpop.eup %3130 }
0x1caf   :  { %1481 = vrot.lane.b32.xlu1 %v3131_v2, %s3166_s3 }
0x1d21   :  { %v1482_v7 = vpop.permute.xlu1 %1481 }
0x1d22   :  { %v1484_v10 = vmul.f32 %v1482_v7, %v1479_v3 }
0x1d24   :  { %v1488_v11 = vadd.f32 %v1487_v9, %v1484_v10 }
0x1d26   :  { %v1490_v13 = vrot.slane %v1488_v11, 4  ;;  %v2029_v14 = vsel %vm90_vm6, %v2028_v12, %v1488_v11  ;;  %v1594_v33 = vrot.slane %v1488_v11, 6 }
0x1d28   :  { %1491 = vrot.lane.b32.xlu0 %v1490_v13, %s3166_s3 }
0x1d9a   :  { %v1492_v15 = vpop.permute.xlu0 %1491 }
0x1d9b   :  { %2787 = vmatmul.mubr.msk.f32.vlgmr.msra.gmra.mrb[12].mxu1 %vm195_vm9, %v1492_v15 }
0x1d9c   :  { %2988 = vmatpush3.bf16.msra.mxu1 %v3452_v17  ;;  %2808 = vmatprep.mubr.msk.f32.mxu1 %vm3164_vm8, %v3165_v37 }
0x1d9d   :  { %2989 = vmatprep.subr.bf16.mxu1 %v3162_v0 }
0x1da0   :  { %2991 = vmatpush3.bf16.msra.mxu1 %v3470_v16 }
0x1da1   :  { %2998 = vmatprep.subr.bf16.mxu1 %v3162_v0 }
0x1e6e   :  { %v1561_v18 = vpop.f32.mrb[12].mxu1 }
0x1e6f   :  { %v1575_v48 = vadd.f32 %v1561_v18, %v3492_v63  ;;  %v2788_v19 = vpop.f32.mrb[13].mxu1  ;;  %v1566_v21 = vrot.slane %v1561_v18, 2 }
0x1e71   :  { %v1577_v20 = vrot.slane %v1575_v48, 2  ;;  %v1568_v22 = vadd.f32 %v1566_v21, %v3508_v8 }
0x1e73   :  { %1578 = vrot.lane.b32.xlu1 %v1577_v20, %s3163_s2  ;;  %v2497_v23 = vmul.f32 -1.442695, %v1568_v22 }
0x1e75   :  { %3132 = vpow2.f32 %v2497_v23 }
0x1e7f   :  { %v3133_v24 = vpop.eup %3132 }
0x1e80   :  { %v1572_v25 = vadd.f32 1.0, %v3133_v24 }
0x1e82   :  { %3134 = vrcp.f32 %v1572_v25 }
0x1e8c   :  { %v3135_v26 = vpop.eup %3134 }
0x1e8d   :  { %v1588_v32 = vsub.f32 1.0, %v3135_v26  ;;  %v1596_v35 = vmul.f32 %v3135_v26, %v1594_v33 }
0x1ee5   :  { %v1579_v27 = vpop.permute.xlu1 %1578 }
0x1ee6   :  { %v1581_v28 = vmul.f32 %v3135_v26, %v1579_v27 }
0x1ee8   :  { %1583 = vrot.lane.b32.xlu0 %v1581_v28, %s3163_s2 }
0x1f5a   :  { %v1584_v29 = vpop.permute.xlu0 %1583 }
0x1f5b   :  { %v1586_v30 = vadd.f32 %v1584_v29, %v3508_v8 }
0x1f5d   :  { %3136 = vtanh.f32 %v1586_v30 }
0x1f67   :  { %v3137_v31 = vpop.eup %3136 }
0x1f68   :  { %1590 = vrot.lane.b32.xlu1 %v3137_v31, %s3166_s3 }
0x1fda   :  { %v1591_v34 = vpop.permute.xlu1 %1590 }
0x1fdb   :  { %v1593_v36 = vmul.f32 %v1591_v34, %v1588_v32 }
0x1fdd   :  { %v1597_v38 = vadd.f32 %v1596_v35, %v1593_v36 }
0x1fdf   :  { %v1599_v40 = vrot.slane %v1597_v38, 6  ;;  %v3564_v39 = vsel %vm92_vm0, %v2029_v14, %v1597_v38 }
0x1fe1   :  { %1600 = vrot.lane.b32.xlu0 %v1599_v40, %s3166_s3 }
0x2053   :  { %v1601_v41 = vpop.permute.xlu0 %1600 }
0x2054   :  { %2798 = vmatmul.mubr.msk.f32.vlgmr.msra.gmra.mrb[14].mxu0 %vm195_vm9, %v1601_v41 }
0x2055   :  { %2994 = vmatpush3.bf16.msra.mxu0 %v3452_v17  ;;  %2819 = vmatprep.mubr.msk.f32.mxu0 %vm3164_vm8, %v3165_v37 }
0x2056   :  { %2995 = vmatprep.subr.bf16.mxu0 %v3162_v0 }
0x2059   :  { %2997 = vmatpush3.bf16.msra.mxu0 %v3470_v16 }
0x2127   :  { %v1670_v8 = vpop.f32.mrb[14].mxu0 }
0x2128   :  { %v1681_v42 = vadd.f32 %v1670_v8, %v3492_v63  ;;  %v2799_v43 = vpop.f32.mrb[15].mxu0  ;;  %v1674_v44 = vadd.f32 %v1670_v8, %v3506_v6 }
0x212a   :  { %1683 = vrot.lane.b32.xlu1 %v1681_v42, %s3163_s2  ;;  %v2499_v46 = vmul.f32 -1.442695, %v1674_v44 }
0x212c   :  { %3138 = vpow2.f32 %v2499_v46 }
0x2136   :  { %v3139_v4 = vpop.eup %3138 }
0x2137   :  { %v1678_v45 = vadd.f32 1.0, %v3139_v4 }
0x2139   :  { %3140 = vrcp.f32 %v1678_v45 }
0x2143   :  { %v3141_v47 = vpop.eup %3140 }
0x2144   :  { %v1693_v54 = vsub.f32 1.0, %v3141_v47  ;;  %v1700_v56 = vmul.f32 %v3141_v47, %v1599_v40 }
0x219c   :  { %v1684_v49 = vpop.permute.xlu1 %1683 }
0x219d   :  { %v1686_v50 = vmul.f32 %v3141_v47, %v1684_v49 }
0x219f   :  { %1688 = vrot.lane.b32.xlu0 %v1686_v50, %s3163_s2 }
0x2211   :  { %v1689_v51 = vpop.permute.xlu0 %1688 }
0x2212   :  { %v1691_v52 = vadd.f32 %v1689_v51, %v3506_v6 }
0x2214   :  { %3142 = vtanh.f32 %v1691_v52 }
0x221e   :  { %v3143_v53 = vpop.eup %3142 }
0x221f   :  { %1695 = vrot.lane.b32.xlu1 %v3143_v53, %s3166_s3 }
0x2291   :  { %v1696_v55 = vpop.permute.xlu1 %1695 }
0x2292   :  { %v1698_v57 = vmul.f32 %v1696_v55, %v1693_v54 }
0x2294   :  { %v3579_v58 = vadd.f32 %v1700_v56, %v1698_v57 }
0x2296   :  { %1703 = vrot.lane.b32.xlu0 %v3579_v58, %s3166_s3  ;;  %v1806_v13 = vrot.slane %v3579_v58, 6 }
0x2308   :  { %v1704_v59 = vpop.permute.xlu0 %1703 }
0x2309   :  { %2809 = vmatmul.mubr.msk.f32.vlgmr.msra.gmra.mrb[14].mxu1 %vm195_vm9, %v1704_v59 }
0x230a   :  { %3000 = vmatpush3.bf16.msra.mxu1 %v3452_v17  ;;  %2830 = vmatprep.mubr.msk.f32.mxu1 %vm3164_vm8, %v3165_v37 }
0x230b   :  { %3001 = vmatprep.subr.bf16.mxu1 %v3162_v0 }
0x230e   :  { %3003 = vmatpush3.bf16.msra.mxu1 %v3470_v16 }
0x23dc   :  { %v1773_v60 = vpop.f32.mrb[14].mxu1 }
0x23dd   :  { %v1787_v61 = vadd.f32 %v1773_v60, %v3492_v63  ;;  %v2810_v62 = vpop.f32.mrb[15].mxu1  ;;  %v1778_v2 = vrot.slane %v1773_v60, 6 }
0x23de   :  { %v2035_v62 = vld [vmem:[%s3754_s9 + $0x8] sm:$0xff] }
0x23df   :  { %v1789_v1 = vrot.slane %v1787_v61, 6  ;;  %v1780_v3 = vadd.f32 %v1778_v2, %v3506_v6  ;;  %v2034_v61 = vld [vmem:[%s3754_s9] sm:$0xff] }
0x23e1   :  { %1790 = vrot.lane.b32.xlu1 %v1789_v1, %s3163_s2  ;;  %v2501_v5 = vmul.f32 -1.442695, %v1780_v3  ;;  %v2036_v1 = vld [vmem:[%s3754_s9 + $0x10] sm:$0xff] }
0x23e3   :  { %3144 = vpow2.f32 %v2501_v5  ;;  %v2132_v5 = vld [vmem:[%s3755_s11] sm:$0xff] }
0x23ed   :  { %v3145_v17 = vpop.eup %3144 }
0x23ee   :  { %v1784_v7 = vadd.f32 1.0, %v3145_v17  ;;  %v2133_v17 = vld [vmem:[%s3755_s11 + $0x8] sm:$0xff] }
0x23f0   :  { %3146 = vrcp.f32 %v1784_v7  ;;  %v2134_v7 = vld [vmem:[%s3755_s11 + $0x10] sm:$0xff] }
0x23fa   :  { %v3147_v37 = vpop.eup %3146 }
0x23fb   :  { %v1800_v12 = vsub.f32 1.0, %v3147_v37  ;;  %v1808_v18 = vmul.f32 %v3147_v37, %v1806_v13 }
0x2453   :  { %v1791_v9 = vpop.permute.xlu1 %1790 }
0x2454   :  { %v1793_v0 = vmul.f32 %v3147_v37, %v1791_v9  ;;  %v3012_v37 = vpack.c.bf16 %v2133_v17, %v2132_v5  ;;  %v2135_v9 = vld [vmem:[%s3755_s11 + $0x18] sm:$0xff]  ;;  %v2512_v5 = vld [vmem:[%s3759_s14] ss:$0 sm:$0xff] }
0x2456   :  { %1795 = vrot.lane.b32.xlu0 %v1793_v0, %s3163_s2  ;;  %v3016_v0 = vpack.c.bf16 %v2135_v9, %v2134_v7  ;;  %3013 = vmatprep.subr.bf16.mxu1 %v3012_v37 }
0x24c8   :  { %v1796_v16 = vpop.permute.xlu0 %1795 }
0x24c9   :  { %v1798_v10 = vadd.f32 %v1796_v16, %v3506_v6  ;;  %v2136_v16 = vld [vmem:[%s3755_s11 + $0x20] sm:$0xff] }
0x24cb   :  { %3148 = vtanh.f32 %v1798_v10  ;;  %v2137_v10 = vld [vmem:[%s3755_s11 + $0x28] sm:$0xff] }
0x24cc   :  { %v3020_v13 = vpack.c.bf16 %v2137_v10, %v2136_v16 }
0x24d5   :  { %v3149_v11 = vpop.eup %3148 }
0x24d6   :  { %1802 = vrot.lane.b32.xlu1 %v3149_v11, %s3166_s3 }
0x2548   :  { %v1803_v14 = vpop.permute.xlu1 %1802 }
0x2549   :  { %v1805_v15 = vmul.f32 %v1803_v14, %v1800_v12 }
0x254b   :  { %v1809_v48 = vadd.f32 %v1808_v18, %v1805_v15  ;;  %v2138_v15 = vld [vmem:[%s3755_s11 + $0x30] sm:$0xff]  ;;  %v2139_v18 = vld [vmem:[%s3755_s11 + $0x38] sm:$0xff] }
0x254d   :  { %v1811_v19 = vrot.slane %v1809_v48, 2  ;;  %v1915_v38 = vrot.slane %v1809_v48, 6  ;;  %v2031_v43 = vsel %vm88_vm5, %v3579_v58, %v1809_v48  ;;  %vm2459_vm5 = vcmask 23553  }
0x254f   :  { %1812 = vrot.lane.b32.xlu0 %v1811_v19, %s3166_s3 }
0x25c1   :  { %v1813_v20 = vpop.permute.xlu0 %1812 }
0x25c2   :  { %2820 = vmatmul.mubr.msk.f32.vlgmr.msra.gmra.mrb[16].mxu0 %vm195_vm9, %v1813_v20 }
0x2695   :  { %v1882_v21 = vpop.f32.mrb[16].mxu0 }
0x2696   :  { %v1896_v22 = vadd.f32 %v1882_v21, %v3492_v63  ;;  %v2821_v23 = vpop.f32.mrb[17].mxu0  ;;  %v1887_v25 = vrot.slane %v1882_v21, 4  ;;  %v3024_v21 = vpack.c.bf16 %v2139_v18, %v2138_v15 }
0x2697   :  { %v2141_v23 = vld [vmem:[%s3755_s11 + $0x48] sm:$0xff] }
0x2698   :  { %v1898_v24 = vrot.slane %v1896_v22, 4  ;;  %v1889_v26 = vadd.f32 %v1887_v25, %v3506_v6  ;;  %v2140_v22 = vld [vmem:[%s3755_s11 + $0x40] sm:$0xff] }
0x2699   :  { %v3028_v25 = vpack.c.bf16 %v2141_v23, %v2140_v22 }
0x269a   :  { %1899 = vrot.lane.b32.xlu1 %v1898_v24, %s3163_s2  ;;  %v2503_v27 = vmul.f32 -1.442695, %v1889_v26  ;;  %v2142_v26 = vld [vmem:[%s3755_s11 + $0x50] sm:$0xff] }
0x269c   :  { %3150 = vpow2.f32 %v2503_v27  ;;  %v2143_v27 = vld [vmem:[%s3755_s11 + $0x58] sm:$0xff] }
0x26a6   :  { %v3151_v28 = vpop.eup %3150 }
0x26a7   :  { %v1893_v29 = vadd.f32 1.0, %v3151_v28  ;;  %v3032_v28 = vpack.c.bf16 %v2143_v27, %v2142_v26 }
0x26a9   :  { %3152 = vrcp.f32 %v1893_v29 }
0x26b3   :  { %v3153_v30 = vpop.eup %3152 }
0x26b4   :  { %v1909_v36 = vsub.f32 1.0, %v3153_v30  ;;  %v1917_v41 = vmul.f32 %v3153_v30, %v1915_v38 }
0x270c   :  { %v1900_v31 = vpop.permute.xlu1 %1899 }
0x270d   :  { %v1902_v32 = vmul.f32 %v3153_v30, %v1900_v31  ;;  %v2144_v30 = vld [vmem:[%s3755_s11 + $0x60] sm:$0xff]  ;;  %v2145_v31 = vld [vmem:[%s3755_s11 + $0x68] sm:$0xff] }
0x270f   :  { %1904 = vrot.lane.b32.xlu0 %v1902_v32, %s3163_s2  ;;  %v3036_v32 = vpack.c.bf16 %v2145_v31, %v2144_v30 }
0x2781   :  { %v1905_v33 = vpop.permute.xlu0 %1904 }
0x2782   :  { %v1907_v34 = vadd.f32 %v1905_v33, %v3506_v6  ;;  %v2146_v33 = vld [vmem:[%s3755_s11 + $0x70] sm:$0xff] }
0x2784   :  { %3154 = vtanh.f32 %v1907_v34  ;;  %v2238_v34 = vld [vmem:[%s3756_s13] sm:$0xff] }
0x278e   :  { %v3155_v35 = vpop.eup %3154 }
0x278f   :  { %1911 = vrot.lane.b32.xlu1 %v3155_v35, %s3166_s3  ;;  %v2239_v35 = vld [vmem:[%s3756_s13 + $0x8] sm:$0xff] }
0x2790   :  { %v3040_v38 = vpack.c.bf16 %v2239_v35, %v2238_v34 }
0x2801   :  { %v1912_v40 = vpop.permute.xlu1 %1911 }
0x2802   :  { %v1914_v8 = vmul.f32 %v1912_v40, %v1909_v36  ;;  %v2240_v36 = vld [vmem:[%s3756_s13 + $0x10] sm:$0xff]  ;;  %v2241_v40 = vld [vmem:[%s3756_s13 + $0x18] sm:$0xff] }
0x2804   :  { %v1918_v42 = vadd.f32 %v1917_v41, %v1914_v8  ;;  %v3044_v41 = vpack.c.bf16 %v2241_v40, %v2240_v36  ;;  %v2242_v8 = vld [vmem:[%s3756_s13 + $0x20] sm:$0xff] }
0x2806   :  { %v1920_v44 = vrot.slane %v1918_v42, 4  ;;  %v3607_v46 = vsel %vm90_vm6, %v2031_v43, %v1918_v42  ;;  %v2024_v12 = vrot.slane %v1918_v42, 6  ;;  %v2243_v42 = vld [vmem:[%s3756_s13 + $0x28] sm:$0xff] }
0x2807   :  { %v3048_v43 = vpack.c.bf16 %v2243_v42, %v2242_v8 }
0x2808   :  { %1921 = vrot.lane.b32.xlu0 %v1920_v44, %s3166_s3  ;;  %v2244_v44 = vld [vmem:[%s3756_s13 + $0x30] sm:$0xff] }
0x287a   :  { %v1922_v4 = vpop.permute.xlu0 %1921 }
0x287b   :  { %2831 = vmatmul.mubr.msk.f32.vlgmr.msra.gmra.mrb[16].mxu1 %vm195_vm9, %v1922_v4 }
0x287c   :  { %3015 = vmatpush3.bf16.msra.mxu1 %v3012_v37 }
0x287d   :  { %3017 = vmatprep.subr.bf16.mxu1 %v3016_v0 }
0x2880   :  { %3019 = vmatpush3.bf16.msra.mxu1 %v3016_v0 }
0x2881   :  { %3021 = vmatprep.subr.bf16.mxu1 %v3020_v13 }
0x2884   :  { %3023 = vmatpush3.bf16.msra.mxu1 %v3020_v13 }
0x2885   :  { %3025 = vmatprep.subr.bf16.mxu1 %v3024_v21 }
0x2888   :  { %3027 = vmatpush3.bf16.msra.mxu1 %v3024_v21 }
0x2889   :  { %3029 = vmatprep.subr.bf16.mxu1 %v3028_v25 }
0x288c   :  { %3031 = vmatpush3.bf16.msra.mxu1 %v3028_v25 }
0x288d   :  { %3033 = vmatprep.subr.bf16.mxu1 %v3032_v28 }
0x2890   :  { %3035 = vmatpush3.bf16.msra.mxu1 %v3032_v28 }
0x2891   :  { %3037 = vmatprep.subr.bf16.mxu1 %v3036_v32 }
0x2894   :  { %3039 = vmatpush3.bf16.msra.mxu1 %v3036_v32 }
0x2895   :  { %2872 = vmatprep.subr.mxu1 %v2146_v33 }
0x2898   :  { %2873 = vmatpush3.msra.mxu1 %v2146_v33 }
0x294e   :  { %v1991_v45 = vpop.f32.mrb[16].mxu1 }
0x294f   :  { %v2005_v47 = vadd.f32 %v1991_v45, %v3492_v63  ;;  %v2832_v49 = vpop.f32.mrb[17].mxu1  ;;  %v1996_v51 = vrot.slane %v1991_v45, 2  ;;  %v2506_v45 = vld [vmem:[%s3757_s10] ss:$0 sm:$0xff] }
0x2951   :  { %v2007_v50 = vrot.slane %v2005_v47, 2  ;;  %v1998_v52 = vadd.f32 %v1996_v51, %v3506_v6 }
0x2953   :  { %2008 = vrot.lane.b32.xlu1 %v2007_v50, %s3163_s2  ;;  %v2505_v53 = vmul.f32 -1.442695, %v1998_v52 }
0x2955   :  { %3156 = vpow2.f32 %v2505_v53 }
0x295f   :  { %v3157_v54 = vpop.eup %3156 }
0x2960   :  { %v2002_v55 = vadd.f32 1.0, %v3157_v54  ;;  %v2246_v54 = vld [vmem:[%s3756_s13 + $0x40] sm:$0xff] }
0x2962   :  { %3158 = vrcp.f32 %v2002_v55  ;;  %v2247_v55 = vld [vmem:[%s3756_s13 + $0x48] sm:$0xff] }
0x296c   :  { %v3159_v56 = vpop.eup %3158 }
0x296d   :  { %v2018_v11 = vsub.f32 1.0, %v3159_v56  ;;  %v2026_v48 = vmul.f32 %v3159_v56, %v2024_v12 }
0x29c5   :  { %v2009_v57 = vpop.permute.xlu1 %2008 }
0x29c6   :  { %v2011_v58 = vmul.f32 %v3159_v56, %v2009_v57  ;;  %v3056_v56 = vpack.c.bf16 %v2247_v55, %v2246_v54  ;;  %v2509_v57 = vld [vmem:[%s3758_s12] ss:$0 sm:$0xff] }
0x29c8   :  { %2013 = vrot.lane.b32.xlu0 %v2011_v58, %s3163_s2 }
0x29cc   :  { %2047 = vrot.lane.b32.xlu0 %v3564_v39, %s3166_s3  ;;  %v3004_v39 = vpack.c.bf16 %v2035_v62, %v2034_v61 }
0x29ce   :  { %3005 = vmatprep.subr.bf16.mxu0 %v3004_v39 }
0x29cf   :  { %3007 = vmatpush3.bf16.msra.mxu0 %v3004_v39 }
0x2a3a   :  { %v2014_v63 = vpop.permute.xlu0 %2013 }
0x2a3b   :  { %v2016_v59 = vadd.f32 %v2014_v63, %v3506_v6  ;;  %v2037_v6 = vld [vmem:[%s3754_s9 + $0x18] sm:$0xff] }
0x2a3c   :  { %v3008_v2 = vpack.c.bf16 %v2037_v6, %v2036_v1  ;;  %v3167_v1 = vmov 1983009808   ;;  %v2343_v6 = vlaneseq }
0x2a3d   :  { %3160 = vtanh.f32 %v2016_v59  ;;  %v2341_v39 = vunpack.c.l.s4 %v3167_v1 }
0x2a3e   :  { %v2048_v60 = vpop.permute.xlu0 %2047  ;;  %3009 = vmatprep.subr.bf16.mxu0 %v3008_v2 }
0x2a3f   :  { %2841 = vmatprep.mubr.msk.f32.mxu0 %vm195_vm9, %v2048_v60  ;;  %3011 = vmatpush3.bf16.msra.mxu0 %v3008_v2  ;;  %v2342_v2 = vunpack.c.0.s8 %v2341_v39 }
0x2a40   :  { %3041 = vmatprep.subr.bf16.mxu0 %v3040_v38 }
0x2a47   :  { %v3161_v3 = vpop.eup %3160 }
0x2a48   :  { %2020 = vrot.lane.b32.xlu1 %v3161_v3, %s3166_s3  ;;  %v2344_v3 = vshrl.u32 %v2343_v6, 7 }
0x2a4a   :  { %v2345_v17 = vsub.s32 %v2342_v2, %v2344_v3  ;;  %v2420_v15 = vsub.s32 1, %v2344_v3 }
0x2aba   :  { %v2021_v14 = vpop.permute.xlu1 %2020 }
0x2abb   :  { %v2023_v19 = vmul.f32 %v2021_v14, %v2018_v11  ;;  %v2375_v11 = vsub.s32 0, %v2344_v3 }
0x2abd   :  { %v2027_v20 = vadd.f32 %v2026_v48, %v2023_v19 }
0x2abf   :  { %v2033_v24 = vsel %vm92_vm0, %v3607_v46, %v2027_v20  ;;  %v2245_v46 = vld [vmem:[%s3756_s13 + $0x38] sm:$0xff]  ;;  %vm2416_vm0 = vcmask 23552  }
0x2ac0   :  { %2049 = vrot.lane.b32.xlu1 %v2033_v24, %s3166_s3  ;;  %v3052_v4 = vpack.c.bf16 %v2245_v46, %v2244_v44 }
0x2b32   :  { %v2050_v29 = vpop.permute.xlu1 %2049 }
0x2b33   :  { %2842 = vmatmul.mubr.msk.f32.vlgmr.msra.gmra.mrb[18].mxu0 %vm195_vm9, %v2050_v29 }
0x2b34   :  { %3043 = vmatpush3.bf16.msra.mxu0 %v3040_v38 }
0x2b35   :  { %3045 = vmatprep.subr.bf16.mxu0 %v3044_v41 }
0x2b38   :  { %3047 = vmatpush3.bf16.msra.mxu0 %v3044_v41 }
0x2b39   :  { %3049 = vmatprep.subr.bf16.mxu0 %v3048_v43 }
0x2b3c   :  { %3051 = vmatpush3.bf16.msra.mxu0 %v3048_v43 }
0x2b3d   :  { %3053 = vmatprep.subr.bf16.mxu0 %v3052_v4 }
0x2b40   :  { %3055 = vmatpush3.bf16.msra.mxu0 %v3052_v4 }
0x2b41   :  { %3057 = vmatprep.subr.bf16.mxu0 %v3056_v56 }
0x2b44   :  { %3059 = vmatpush3.bf16.msra.mxu0 %v3056_v56 }
0x2c06   :  { %v2843_v47 = vpop.f32.mrb[18].mxu0 }
0x2c07   :  { %v2127_v49 = vadd.f32 %v2843_v47, %v2506_v45  ;;  %v2121_v50 = vpop.f32.mrb[19].mxu0 }
0x2c08   :  { %v2122_v51 = vadd.f32 %v2506_v45, %v2121_v50 }
0x2c09   :  { %v2131_v53 = vmax.f32 %v2127_v49, 0.0 }
0x2c0a   :  { %v2130_v52 = vmax.f32 %v2122_v51, 0.0 }
0x2c0c   :  { %2874 = vmatprep.mubr.msk.f32.mxu1 %vm2154_vm10, %v2130_v52 }
0x2c0d   :  { %2875 = vmatmul.mubr.msk.f32.vlgmr.msra.gmra.mrb[18].mxu1 %vm2154_vm10, %v2131_v53 }
0x2ce0   :  { %v2876_v58 = vpop.f32.mrb[18].mxu1 }
0x2ce1   :  { %v2233_v63 = vadd.f32 %v2876_v58, %v2509_v57  ;;  %v2227_v59 = vpop.f32.mrb[19].mxu1 }
0x2ce2   :  { %v2228_v60 = vadd.f32 %v2509_v57, %v2227_v59 }
0x2ce3   :  { %v2237_v62 = vmax.f32 %v2233_v63, 0.0 }
0x2ce4   :  { %v2236_v61 = vmax.f32 %v2228_v60, 0.0 }
0x2ce6   :  { %2897 = vmatprep.mubr.msk.f32.mxu0 %vm2255_vm11, %v2236_v61 }
0x2ce7   :  { %2898 = vmatmul.mubr.msk.f32.vlgmr.msra.gmra.mrb[20].mxu0 %vm2255_vm11, %v2237_v62 }
0x2dba   :  { %v2899_v7 = vpop.f32.mrb[20].mxu0 }
0x2dbb   :  { %v2334_v37 = vadd.f32 %v2899_v7, %v2512_v5  ;;  %v2328_v9 = vpop.f32.mrb[21].mxu0 }
0x2dbc   :  { %v2329_v0 = vadd.f32 %v2512_v5, %v2328_v9 }
0x2dbd   :  { %v2356_v16 = vcombine.high %v2334_v37, %v2334_v37  ;;  %v2363_v10 = vrot.slane %v2334_v37, %v2345_v17 }
0x2dbe   :  { %v2339_v12 = vcombine.high %v2329_v0, %v2329_v0  ;;  %v2346_v13 = vrot.slane %v2329_v0, %v2345_v17 }
0x2dbf   :  { %v2370_v14 = vrot.slane %v2356_v16, %v2345_v17  ;;  %v2371_v19 = vcombine.high %v2363_v10, %v2363_v10  ;;  %v2392_v32 = vrot.slane %v2363_v10, %v2375_v11  ;;  %v2437_v36 = vrot.slane %v2363_v10, %v2420_v15 }
0x2dc0   :  { %v2353_v18 = vrot.slane %v2339_v12, %v2345_v17  ;;  %v2354_v48 = vcombine.high %v2346_v13, %v2346_v13  ;;  %v2376_v22 = vrot.slane %v2346_v13, %v2375_v11  ;;  %v2421_v26 = vrot.slane %v2346_v13, %v2420_v15 }
0x2dc1   :  { %v2372_v20 = vcombine.high %v2370_v14, %v2370_v14  ;;  %v2396_v35 = vrot.slane %v2371_v19, %v2375_v11  ;;  %v2400_v41 = vrot.slane %v2370_v14, %v2375_v11  ;;  %v2441_v8 = vrot.slane %v2371_v19, %v2420_v15 }
0x2dc2   :  { %v2355_v21 = vcombine.high %v2353_v18, %v2353_v18  ;;  %v2380_v23 = vrot.slane %v2354_v48, %v2375_v11  ;;  %v2384_v24 = vrot.slane %v2353_v18, %v2375_v11  ;;  %v2425_v27 = vrot.slane %v2354_v48, %v2420_v15 }
0x2dc3   :  { %v2449_v25 = vrot.slane %v2372_v20, %v2420_v15  ;;  %v2429_v28 = vrot.slane %v2353_v18, %v2420_v15  ;;  %v2404_v44 = vrot.slane %v2372_v20, %v2375_v11  ;;  %v2445_v46 = vrot.slane %v2370_v14, %v2420_v15 }
0x2dc4   :  { %v2388_v29 = vrot.slane %v2355_v21, %v2375_v11  ;;  %v2405_v30 = vsel %vm55_vm1, %v2380_v23, %v2376_v22  ;;  %v2433_v31 = vrot.slane %v2355_v21, %v2420_v15  ;;  %v2450_v34 = vsel %vm2406_vm13, %v2425_v27, %v2421_v26 }
0x2dc5   :  { %2516 = vst.msk [vmem:[%s3760_s15 + $0xf] sm:$0x1] %vm2461_vm12, %v2449_v25  ;;  %v2407_v33 = vsel %vm2406_vm13, %v2384_v24, %v2405_v30  ;;  %v2451_v40 = vsel %vm60_vm2, %v2429_v28, %v2450_v34 }
0x2dc6   :  { %v2408_v38 = vsel %vm60_vm2, %v2388_v29, %v2407_v33  ;;  %v2452_v43 = vsel %vm2409_vm14, %v2433_v31, %v2451_v40 }
0x2dc7   :  { %v2410_v42 = vsel %vm2409_vm14, %v2392_v32, %v2408_v38  ;;  %v2453_v45 = vsel %vm65_vm3, %v2437_v36, %v2452_v43 }
0x2dc8   :  { %v2411_v4 = vsel %vm65_vm3, %v2396_v35, %v2410_v42  ;;  %v2454_v49 = vsel %vm2412_vm15, %v2441_v8, %v2453_v45 }
0x2dc9   :  { %v2413_v47 = vsel %vm2412_vm15, %v2400_v41, %v2411_v4  ;;  %v2455_v51 = vsel %vm70_vm4, %v2445_v46, %v2454_v49 }
0x2dca   :  { %v2414_v50 = vsel %vm70_vm4, %v2404_v44, %v2413_v47  ;;  %2515 = vst.msk [vmem:[%s3760_s15 + $0x7] sm:$0xfe] %vm2459_vm5, %v2455_v51 }
0x2dcb   :  { %2417 = vst.msk [vmem:[%s3760_s15] sm:$0xff] %vm2416_vm0, %v2414_v50 }

</bundles_post_ra>
